<compile_context>
chip_gen: v7x
topology: tpu7x:2x2x1
jax: 0.10.0
libtpu: 0.0.40
codegen_flags: <defaults>
</compile_context>

<pallas_src>
import functools
import math

import jax
import jax.numpy as jnp
from jax.experimental import pallas as pl
from jax.experimental.pallas import tpu as pltpu


_VMEM_LIMIT = 48 * 1024 * 1024   # safe on v5e/v6e/v7x (v7x physical = 64 MiB)

D_REL = 1936      # 512*3 (visual) + 200*2 (semantic): original embed dim
D_PAD = 2048      # lane-/MXU-aligned padded embed dim used by the kernels
FFN = 2048        # transformer feed-forward dim (== D_PAD -> uniform blocks)
N_HEAD = 8
LN_EPS = 1e-5


# ---------------------------------------------------------------------------
# Quantised linear:  o = (x @ dequant(w_q)) * scale + bias
# ---------------------------------------------------------------------------

def _linear_q_kernel(x_ref, w_ref, s_ref, b_ref, o_ref, *, nk):
    wb = w_ref[...].astype(jnp.bfloat16)
    part = jnp.dot(x_ref[...], wb, preferred_element_type=jnp.float32)
    if nk == 1:
        # single K step: write directly (no zero-init / re-read of the block)
        o_ref[...] = part * s_ref[...] + b_ref[...]
    else:
        k = pl.program_id(0)

        @pl.when(k == 0)
        def _():
            o_ref[...] = jnp.zeros_like(o_ref)

        o_ref[...] += part

        @pl.when(k == nk - 1)
        def _():
            o_ref[...] = o_ref[...] * s_ref[...] + b_ref[...]


def pallas_linear_q(x_bf16, w_q, scale, bias, *, tk=None):
    """x: (M, K) bf16, w_q: (K, N) int8, scale/bias: (1, N) f32 -> (M, N) f32."""
    M, K = x_bf16.shape
    Kw, N = w_q.shape
    assert K == Kw
    if tk is None or tk > K:
        tk = K
    assert K % tk == 0
    nk = K // tk
    return pl.pallas_call(
        functools.partial(_linear_q_kernel, nk=nk),
        out_shape=jax.ShapeDtypeStruct((M, N), jnp.float32),
        grid_spec=pltpu.PrefetchScalarGridSpec(
            num_scalar_prefetch=0,
            grid=(nk,),
            in_specs=[
                pl.BlockSpec((M, tk), lambda k: (0, k)),
                pl.BlockSpec((tk, N), lambda k: (k, 0)),
                pl.BlockSpec((1, N), lambda k: (0, 0)),
                pl.BlockSpec((1, N), lambda k: (0, 0)),
            ],
            out_specs=pl.BlockSpec((M, N), lambda k: (0, 0)),
        ),
        compiler_params=pltpu.CompilerParams(
            dimension_semantics=("arbitrary",),
            vmem_limit_bytes=_VMEM_LIMIT,
        ),
    )(x_bf16, w_q, scale, bias)


# ---------------------------------------------------------------------------
# Fused transformer encoder layer + relation heads (single pallas_call).
# Streamed weight layout (columns):  [ wq | wk | wv | wo | ffn1 | ffn2 ]
# grid step j:                          0    1    2    3    4      5
# ---------------------------------------------------------------------------

def _fused_layer_kernel(x_ref, mask_ref, w_ref, s_ref, b_ref, wrel_ref,
                        brel_ref, g1_ref, be1_ref, g2_ref, be2_ref,
                        o_ref, qkv_sc, attn_sc, x1_sc, h_sc,
                        *, nhead, d_model, d_real, eps, sigmoid_from):
    j = pl.program_id(0)
    dh = d_model // nhead

    def stream_matmul(lhs_f32):
        wb = w_ref[...].astype(jnp.bfloat16)            # int8 -> bf16 dequant
        y = jnp.dot(lhs_f32.astype(jnp.bfloat16), wb,
                    preferred_element_type=jnp.float32)
        return y * s_ref[...] + b_ref[...]              # per-col scale + bias

    lane = jax.lax.broadcasted_iota(jnp.int32, (1, d_model), 1)
    dmask = (lane < d_real).astype(jnp.float32)
    inv_d = 1.0 / d_real

    def masked_ln(xr, g, be):
        # LayerNorm over the real (unpadded) 1936 dims; padded lanes re-zeroed.
        xm = xr * dmask
        mu = jnp.sum(xm, axis=-1, keepdims=True) * inv_d
        dev = (xr - mu) * dmask
        var = jnp.sum(dev * dev, axis=-1, keepdims=True) * inv_d
        y = dev * jax.lax.rsqrt(var + eps)
        return (y * g + be) * dmask

    # phase 1: q / k / v projections (grid steps 0..2)
    @pl.when(j < 3)
    def _():
        qkv_sc[j] = stream_matmul(x_ref[...])

    # phase 2: multi-head attention, at the end of step 2
    @pl.when(j == 2)
    def _():
        q_all = qkv_sc[0]
        k_all = qkv_sc[1]
        v_all = qkv_sc[2]
        mask = mask_ref[...]
        scl = 1.0 / math.sqrt(dh)
        for h in range(nhead):                          # static unroll (8)
            q = q_all[:, h * dh:(h + 1) * dh]
            k = k_all[:, h * dh:(h + 1) * dh]
            v = v_all[:, h * dh:(h + 1) * dh]
            s = jax.lax.dot_general(q, k, (((1,), (1,)), ((), ())),
                                    preferred_element_type=jnp.float32)
            s = s * scl + mask
            s = s - jnp.max(s, axis=-1, keepdims=True)
            p = jnp.exp(s)
            p = p / jnp.sum(p, axis=-1, keepdims=True)
            attn_sc[:, pl.ds(h * dh, dh)] = jnp.dot(
                p, v, preferred_element_type=jnp.float32)

    # phase 3: attention out-proj + residual + LayerNorm1 (step 3)
    @pl.when(j == 3)
    def _():
        y = stream_matmul(attn_sc[...]) + x_ref[...]
        x1_sc[...] = masked_ln(y, g1_ref[...], be1_ref[...])

    # phase 4: feed-forward up projection + ReLU (step 4)
    @pl.when(j == 4)
    def _():
        h_sc[...] = jnp.maximum(stream_matmul(x1_sc[...]), 0.0)

    # phase 5: FFN down proj + residual + LayerNorm2 + fused rel heads (step 5)
    @pl.when(j == 5)
    def _():
        y = stream_matmul(h_sc[...]) + x1_sc[...]
        g = masked_ln(y, g2_ref[...], be2_ref[...])
        rel = jnp.dot(g.astype(jnp.bfloat16), wrel_ref[...],
                      preferred_element_type=jnp.float32) + brel_ref[...]
        cols = jax.lax.broadcasted_iota(jnp.int32, rel.shape, 1)
        o_ref[...] = jnp.where(cols >= sigmoid_from, jax.nn.sigmoid(rel), rel)


def fused_transformer_rel(params, x, mask):
    """x: (M, D_PAD) f32 padded rel features, mask: (M, M) additive f32."""
    M, dm = x.shape
    w_cat, s_cat, b_cat = params["w_cat"]
    w_rel, b_rel = params["rel_head"]
    g1, be1 = params["ln1"]
    g2, be2 = params["ln2"]
    n_steps = w_cat.shape[1] // dm            # 6: q, k, v, wo, ffn1, ffn2
    n_rel_pad = w_rel.shape[1]
    kernel = functools.partial(
        _fused_layer_kernel, nhead=params["nhead"], d_model=dm,
        d_real=D_REL, eps=LN_EPS, sigmoid_from=params["rel_splits"][0])
    return pl.pallas_call(
        kernel,
        out_shape=jax.ShapeDtypeStruct((M, n_rel_pad), jnp.float32),
        grid_spec=pltpu.PrefetchScalarGridSpec(
            num_scalar_prefetch=0,
            grid=(n_steps,),
            in_specs=[
                pl.BlockSpec((M, dm), lambda j: (0, 0)),          # x (resident)
                pl.BlockSpec((M, M), lambda j: (0, 0)),           # attn mask
                pl.BlockSpec((dm, dm), lambda j: (0, j)),         # streamed W
                pl.BlockSpec((1, dm), lambda j: (0, j)),          # per-col scale
                pl.BlockSpec((1, dm), lambda j: (0, j)),          # bias
                pl.BlockSpec((dm, n_rel_pad), lambda j: (0, 0)),  # rel-head W
                pl.BlockSpec((1, n_rel_pad), lambda j: (0, 0)),   # rel-head b
                pl.BlockSpec((1, dm), lambda j: (0, 0)),          # ln1 gamma
                pl.BlockSpec((1, dm), lambda j: (0, 0)),          # ln1 beta
                pl.BlockSpec((1, dm), lambda j: (0, 0)),          # ln2 gamma
                pl.BlockSpec((1, dm), lambda j: (0, 0)),          # ln2 beta
            ],
            out_specs=pl.BlockSpec((M, n_rel_pad), lambda j: (0, 0)),
            scratch_shapes=[
                pltpu.VMEM((3, M, dm), jnp.float32),   # q, k, v
                pltpu.VMEM((M, dm), jnp.float32),      # attention output
                pltpu.VMEM((M, dm), jnp.float32),      # x1 = LN1(...)
                pltpu.VMEM((M, dm), jnp.float32),      # ffn hidden
            ],
        ),
        compiler_params=pltpu.CompilerParams(
            dimension_semantics=("arbitrary",),
            vmem_limit_bytes=_VMEM_LIMIT,
        ),
    )(x, mask, w_cat, s_cat, b_cat, w_rel, b_rel, g1, be1, g2, be2)


# ---------------------------------------------------------------------------
# Parameters (deterministic, synthetic).  Big weights stored int8 + scale.
# ---------------------------------------------------------------------------

def _quant_int8(w):
    amax = jnp.max(jnp.abs(w), axis=0, keepdims=True)
    scale = jnp.where(amax > 0, amax / 127.0, 1.0)
    q = jnp.clip(jnp.round(w / scale), -127, 127).astype(jnp.int8)
    return q, scale.astype(jnp.float32)


def init_params(key, num_obj_classes, a_cls, s_cls, c_cls):
    assert FFN == D_PAD  # uniform streamed blocks in the fused layer kernel

    def lin(k, din, dout, scale=0.02):
        kw, kb = jax.random.split(k)
        w = scale * jax.random.normal(kw, (din, dout), jnp.float32)
        b = 0.01 * jax.random.normal(kb, (dout,), jnp.float32)
        return w, b

    keys = jax.random.split(key, 16)

    # subj_fc / obj_fc fused along output columns: [Ws | Wo] (1024, 1024)
    w_s, b_s = lin(keys[0], 1024, 512)
    w_o, b_o = lin(keys[1], 1024, 512)
    q_so, s_so = _quant_int8(jnp.concatenate([w_s, w_o], axis=1))
    b_so = jnp.concatenate([b_s, b_o], axis=0).reshape(1, -1)

    # union_func1 (1x1 conv) folded into vr_fc (exact: composition of two
    # linear maps, valid since USE_SPATIAL_MASK=False).  vr_fc rows are
    # generated in PyTorch NCHW (c, h, w) flatten order, then permuted to
    # channels-last (h, w, c) order to match the channels-last union input.
    w_conv, b_conv = lin(keys[2], 256, 256)
    w_vr, b_vr = lin(keys[3], 256 * 7 * 7, 512)
    w_vr_hwc = w_vr.reshape(256, 7, 7, 512).transpose(1, 2, 0, 3)
    w_vr_hwc = w_vr_hwc.reshape(49, 256, 512)
    w_eff = jnp.einsum('cd,sdn->scn', w_conv, w_vr_hwc).reshape(49 * 256, 512)
    b_eff = b_vr + jnp.einsum('d,sdn->n', b_conv, w_vr_hwc)
    q_vr, s_vr = _quant_int8(w_eff)

    obj_embed = 0.1 * jax.random.normal(keys[4], (num_obj_classes, 200), jnp.float32)
    obj_embed2 = 0.1 * jax.random.normal(keys[5], (num_obj_classes, 200), jnp.float32)

    # Transformer layer at padded embed dim (1936 -> 2048); all six weight
    # matrices concatenated column-wise for back-to-back streaming.
    wq, bq = lin(keys[6], D_PAD, D_PAD)
    wk, bk = lin(keys[7], D_PAD, D_PAD)
    wv, bv = lin(keys[8], D_PAD, D_PAD)
    wo, bo = lin(keys[9], D_PAD, D_PAD)
    wf1, bf1 = lin(keys[10], D_PAD, FFN)
    wf2, bf2 = lin(keys[11], FFN, D_PAD)
    w_cat = jnp.concatenate([wq, wk, wv, wo, wf1, wf2], axis=1)   # (2048, 12288)
    b_cat = jnp.concatenate([bq, bk, bv, bo, bf1, bf2], axis=0).reshape(1, -1)
    q_cat, s_cat = _quant_int8(w_cat)

    # Fused rel heads: rows zero-padded 1936 -> 2048 (exact: padded lanes of
    # the hidden state are zero), columns zero-padded to 128 (lane dense).
    wa, ba = lin(keys[12], D_REL, a_cls)
    ws, bs = lin(keys[13], D_REL, s_cls)
    wc, bc = lin(keys[14], D_REL, c_cls)
    n_rel = a_cls + s_cls + c_cls
    w_rel = jnp.concatenate([wa, ws, wc], axis=1)
    w_rel = jnp.pad(w_rel, ((0, D_PAD - D_REL), (0, 128 - n_rel)))
    b_rel = jnp.pad(jnp.concatenate([ba, bs, bc], axis=0), (0, 128 - n_rel))

    return {
        "so_fc": (q_so, s_so, b_so),
        "vr_eff": (q_vr, s_vr, b_eff.reshape(1, -1)),
        "obj_embed": obj_embed,
        "obj_embed2": obj_embed2,
        "w_cat": (q_cat, s_cat, b_cat),
        "rel_head": (w_rel.astype(jnp.bfloat16), b_rel.reshape(1, -1)),
        "ln1": (jnp.ones((1, D_PAD), jnp.float32), jnp.zeros((1, D_PAD), jnp.float32)),
        "ln2": (jnp.ones((1, D_PAD), jnp.float32), jnp.zeros((1, D_PAD), jnp.float32)),
        "rel_splits": (a_cls, s_cls, c_cls),
        "nhead": N_HEAD,
    }


# ---------------------------------------------------------------------------
# Model forward (eval mode: dropout = identity)
# ---------------------------------------------------------------------------

def sttran_forward(params, entry):
    entry = dict(entry)

    # ObjectClassifier, sg_mode == 'predcls': just copy GT labels/scores.
    entry["pred_labels"] = entry["gt_labels"]
    entry["pred_scores"] = entry["gt_scores"]

    features = entry["features"]
    pair_idx = entry["pair_idx"]
    im_idx = entry["im_idx"]
    NP = pair_idx.shape[0]

    # subject_feature_type == 'img': subj_fc / obj_fc fused into one call.
    feat_s = jnp.take(features, pair_idx[:, 0], axis=0)
    feat_o = jnp.take(features, pair_idx[:, 1], axis=0)
    x_so = jnp.concatenate([feat_s, feat_o], axis=0).astype(jnp.bfloat16)
    so = pallas_linear_q(x_so, *params["so_fc"])          # (2*NP, 1024)
    subj_rep = so[:NP, :512]
    obj_rep = so[NP:, 512:]

    # union_func1 folded into vr_fc: single streamed matmul on channels-last
    # flattened union features.
    # TODO(synk): cfg.MODEL.USE_SPATIAL_MASK=False config -- the spatial-mask
    # CNN branch (self.conv) is not exercised in this forward path.
    uf = entry["union_feat"]                              # (NP, 256, 7, 7)
    uf_cl = uf.transpose(0, 2, 3, 1).reshape(NP, 7 * 7 * 256).astype(jnp.bfloat16)
    vr = pallas_linear_q(uf_cl, *params["vr_eff"], tk=6272)   # (NP, 512)

    subj_class = jnp.take(entry["pred_labels"], pair_idx[:, 0], axis=0)
    obj_class = jnp.take(entry["pred_labels"], pair_idx[:, 1], axis=0)
    subj_emb = jnp.take(params["obj_embed"], subj_class, axis=0)
    obj_emb = jnp.take(params["obj_embed2"], obj_class, axis=0)

    rel_features = jnp.concatenate(
        [subj_rep, obj_rep, vr, subj_emb, obj_emb], axis=1)        # (NP, 1936)
    x = jnp.pad(rel_features, ((0, 0), (0, D_PAD - D_REL)))        # (NP, 2048)

    # TODO(synk): the original `transformer` (glocal spatial/temporal) class
    # definition was not provided; a single post-norm MHA+FFN encoder layer
    # with per-frame (im_idx) attention masking is used in its place.
    # TODO(synk): for large pair counts, build the mask in-kernel from im_idx
    # (scalar prefetch) and tile attention flash-style instead of an (N,N) mask.
    mask = jnp.where(im_idx[:, None] == im_idx[None, :], 0.0, -1e9).astype(jnp.float32)

    rel_out = fused_transformer_rel(params, x, mask)               # (NP, 128)

    a_cls, s_cls, c_cls = params["rel_splits"]
    entry["attention_distribution"] = rel_out[:, :a_cls]
    entry["spatial_distribution"] = rel_out[:, a_cls:a_cls + s_cls]
    entry["contacting_distribution"] = rel_out[:, a_cls + s_cls:a_cls + s_cls + c_cls]
    return entry


# ---------------------------------------------------------------------------
# Driver
# ---------------------------------------------------------------------------

if __name__ == "__main__":
    key = jax.random.PRNGKey(0)
    num_obj_classes = 10
    a_cls, s_cls, c_cls = 3, 6, 17
    NB, NP = 6, 8  # number of boxes, number of human-object pairs

    pkey, dkey = jax.random.split(key)
    params = init_params(pkey, num_obj_classes, a_cls, s_cls, c_cls)

    ks = jax.random.split(dkey, 4)
    features = jax.random.normal(ks[0], (NB, 1024), jnp.float32)
    union_feat = jax.random.normal(ks[1], (NP, 256, 7, 7), jnp.float32)
    gt_labels = jax.random.randint(ks[2], (NB,), 1, num_obj_classes)
    gt_scores = jax.nn.softmax(jax.random.normal(ks[3], (NB,)), axis=-1)

    # two frames: human box 0 in frame 0, human box 3 in frame 1
    pair_idx = jnp.array([[0, 1], [0, 2], [0, 1], [0, 2],
                          [3, 4], [3, 5], [3, 4], [3, 5]], dtype=jnp.int32)
    im_idx = jnp.array([0, 0, 0, 0, 1, 1, 1, 1], dtype=jnp.int32)

    entry = {
        "features": features,
        "union_feat": union_feat,
        "gt_labels": gt_labels,
        "gt_scores": gt_scores,
        "pair_idx": pair_idx,
        "im_idx": im_idx,
    }

    out = sttran_forward(params, entry)
    jax.block_until_ready(out["attention_distribution"])
    jax.block_until_ready(out["spatial_distribution"])
    jax.block_until_ready(out["contacting_distribution"])

    assert out["attention_distribution"].shape == (NP, a_cls)
    assert out["spatial_distribution"].shape == (NP, s_cls)
    assert out["contacting_distribution"].shape == (NP, c_cls)
    assert bool(jnp.all(out["spatial_distribution"] >= 0.0) &
                jnp.all(out["spatial_distribution"] <= 1.0))
    assert bool(jnp.all(out["contacting_distribution"] >= 0.0) &
                jnp.all(out["contacting_distribution"] <= 1.0))
    print("KERNEL_OK")
</pallas_src>

<mosaic_0001>
module attributes {stable_mosaic.version = 11 : i64} {
  func.func @_linear_q_kernel(%arg0: i32, %arg1: memref<16x1024xbf16, #tpu.memory_space<vmem>>, %arg2: memref<1024x1024xi8, #tpu.memory_space<vmem>>, %arg3: memref<1x1024xf32, #tpu.memory_space<vmem>>, %arg4: memref<1x1024xf32, #tpu.memory_space<vmem>>, %arg5: memref<16x1024xf32, #tpu.memory_space<vmem>>) attributes {dimension_semantics = [#tpu.dimension_semantics<arbitrary>], iteration_bounds = array<i64: 1>, scalar_prefetch = 0 : i64, scratch_operands = 0 : i64, tpu.core_type = #tpu.core_type<tc>, window_params = [{transform_indices = @transform_0, window_bounds = array<i64: 16, 1024>}, {transform_indices = @transform_1, window_bounds = array<i64: 1024, 1024>}, {pipeline_mode = #tpu.pipeline_mode<synchronous>, transform_indices = @transform_2, window_bounds = array<i64: 1, 1024>}, {pipeline_mode = #tpu.pipeline_mode<synchronous>, transform_indices = @transform_3, window_bounds = array<i64: 1, 1024>}, {pipeline_mode = #tpu.pipeline_mode<synchronous>, transform_indices = @transform_4, window_bounds = array<i64: 16, 1024>}]} {
    %c0 = arith.constant 0 : index
    %c0_0 = arith.constant 0 : index
    %0 = vector.load %arg2[%c0, %c0_0] : memref<1024x1024xi8, #tpu.memory_space<vmem>>, vector<1024x1024xi8>
    %1 = arith.sitofp %0 : vector<1024x1024xi8> to vector<1024x1024xbf16>
    %c0_1 = arith.constant 0 : index
    %c0_2 = arith.constant 0 : index
    %2 = vector.load %arg1[%c0_1, %c0_2] : memref<16x1024xbf16, #tpu.memory_space<vmem>>, vector<16x1024xbf16>
    %cst = arith.constant dense<0.000000e+00> : vector<16x1024xf32>
    %3 = tpu.matmul %2, %1, %cst {dimension_numbers = #tpu.dot_dimension_numbers<[1], [0], [0], [1], [0, 0, 1, 1], [], []>} : vector<16x1024xbf16>, vector<1024x1024xbf16>, vector<16x1024xf32> -> vector<16x1024xf32>
    %c0_3 = arith.constant 0 : index
    %c0_4 = arith.constant 0 : index
    %4 = vector.load %arg3[%c0_3, %c0_4] : memref<1x1024xf32, #tpu.memory_space<vmem>>, vector<1x1024xf32>
    %5 = vector.broadcast %4 : vector<1x1024xf32> to vector<16x1024xf32>
    %6 = arith.mulf %3, %5 : vector<16x1024xf32>
    %c0_5 = arith.constant 0 : index
    %c0_6 = arith.constant 0 : index
    %7 = vector.load %arg4[%c0_5, %c0_6] : memref<1x1024xf32, #tpu.memory_space<vmem>>, vector<1x1024xf32>
    %8 = vector.broadcast %7 : vector<1x1024xf32> to vector<16x1024xf32>
    %9 = arith.addf %6, %8 : vector<16x1024xf32>
    %c0_7 = arith.constant 0 : index
    %c0_8 = arith.constant 0 : index
    %10 = vector.load %arg5[%c0_7, %c0_8] : memref<16x1024xf32, #tpu.memory_space<vmem>>, vector<16x1024xf32>
    tpu.vector_store %arg5[%c0_7, %c0_8], %9 {strides = array<i32>} : memref<16x1024xf32, #tpu.memory_space<vmem>>, vector<16x1024xf32>,
    return
  }
  func.func @transform_0(%arg0: i32) -> (i32, i32) {
    %c0_i32 = arith.constant 0 : i32
    %c0_i32_0 = arith.constant 0 : i32
    return %c0_i32, %arg0 : i32, i32
  }
  func.func @transform_1(%arg0: i32) -> (i32, i32) {
    %c0_i32 = arith.constant 0 : i32
    %c0_i32_0 = arith.constant 0 : i32
    return %arg0, %c0_i32 : i32, i32
  }
  func.func @transform_2(%arg0: i32) -> (i32, i32) {
    %c0_i32 = arith.constant 0 : i32
    %c0_i32_0 = arith.constant 0 : i32
    %c0_i32_1 = arith.constant 0 : i32
    return %c0_i32, %c0_i32_0 : i32, i32
  }
  func.func @transform_3(%arg0: i32) -> (i32, i32) {
    %c0_i32 = arith.constant 0 : i32
    %c0_i32_0 = arith.constant 0 : i32
    %c0_i32_1 = arith.constant 0 : i32
    return %c0_i32, %c0_i32_0 : i32, i32
  }
  func.func @transform_4(%arg0: i32) -> (i32, i32) {
    %c0_i32 = arith.constant 0 : i32
    %c0_i32_0 = arith.constant 0 : i32
    %c0_i32_1 = arith.constant 0 : i32
    return %c0_i32, %c0_i32_0 : i32, i32
  }
}

</mosaic_0001>

<bundles_post_ra>
// kernel: tpu_custom_call.1
= control target key start
LH: loop header
LB: loop body
LE: loop exit
PB: predicated region body
PF: predicated region fallthrough
CT: control target
= control target key end

     0   :  { %9 = vsyncpa [#allocation3], 0  ;;  %s2073_s0 = inlined_call_operand.hbm [shape: bf16[16,1024], index: 0, kind: input, shape index: {}]   ;;  %s2074_s1 = inlined_call_operand.hbm [shape: s8[1024,1024], index: 1, kind: input, shape index: {}]   ;;  %s2075_s2 = inlined_call_operand.hbm [shape: f32[1,1024], index: 2, kind: input, shape index: {}]   ;;  %s2076_s3 = inlined_call_operand.vmem [shape: f32[1,1024], index: 3, kind: input, shape index: {}]   ;;  %s2077_s4 = inlined_call_operand.hbm [shape: f32[16,1024], index: 4, kind: output, shape index: {}]  }
   0x1   :  { %10 = vsyncpa [#allocation6], 0 }
   0x2   :  { %11 = vsyncpa [#allocation4], 0  ;;  %s1869_s15 = smov [#allocation5]   ;;  %s1775_s19 = scalar_lea.hbm %s2074_s1, 32768 }
   0x3   :  { %s29_s16 = sshll.u32 %s1869_s15, 4  ;;  %p1776_p0 = scmp.ne.s32.totalorder %s2074_s1, %s1775_s19  ;;  %s30_s16 = int_to_ptr.vmem [resolvable:$true] %s29_s16 }
   0x4   :  { %p1779_p1 = scmp.lt.u32.totalorder %s1775_s19, %s2074_s1 }
   0x6   :  { %p1781_p2 = pnand %p1779_p1, %p1776_p0 }
   0x8   :  { %1784 = shalt.err (!%p1781_p2)
}
   0x9   :  { %s1785_s24 = scalar_lea.vmem %s30_s16, 32768  ;;  %p1790_p4 = scmp.lt.s32.totalorder %s30_s16, %s30_s16 }
   0xa   :  { %p1786_p3 = scmp.ne.s32.totalorder %s30_s16, %s1785_s24  ;;  %p1791_p5 = scmp.lt.s32.totalorder %s1785_s24, %s1785_s24 }
   0xc   :  { %p1792_p6 = por %p1791_p5, %p1790_p4 }
   0xe   :  { %p1793_p7 = pnand %p1792_p6, %p1786_p3 }
  0x10   :  { %1796 = shalt.err (!%p1793_p7)
}
  0x11   :  { %s1870_s25 = smov 1024   ;;  %s1871_s26 = smov 64  }
  0x12   :  { %35 = dma.hbm_to_vmem [thread:$0]  %s2074_s1, 32768, %s30_s16, [#allocation6], %s1870_s25, %s1870_s25, %s1871_s26  }
  0x13   :  { %s1872_s29 = smov [#allocation2]   ;;  %s1797_s7 = scalar_lea.hbm %s2073_s0, 1024 }
  0x14   :  { %s17_s30 = sshll.u32 %s1872_s29, 4  ;;  %p1798_p8 = scmp.ne.s32.totalorder %s2073_s0, %s1797_s7  ;;  %s18_s30 = int_to_ptr.vmem [resolvable:$true] %s17_s30 }
  0x15   :  { %p1801_p9 = scmp.lt.u32.totalorder %s1797_s7, %s2073_s0 }
  0x17   :  { %p1803_p10 = pnand %p1801_p9, %p1798_p8 }
  0x19   :  { %1806 = shalt.err (!%p1803_p10)
}
  0x1a   :  { %s1807_s12 = scalar_lea.vmem %s18_s30, 1024  ;;  %p1812_p12 = scmp.lt.s32.totalorder %s18_s30, %s18_s30 }
  0x1b   :  { %p1808_p11 = scmp.ne.s32.totalorder %s18_s30, %s1807_s12  ;;  %p1813_p13 = scmp.lt.s32.totalorder %s1807_s12, %s1807_s12 }
  0x1d   :  { %p1814_p0 = por %p1813_p13, %p1812_p12 }
  0x1f   :  { %p1815_p1 = pnand %p1814_p0, %p1808_p11 }
  0x21   :  { %1818 = shalt.err (!%p1815_p1)
}
  0x22   :  { %s1873_s1 = smov 512   ;;  %s1874_s13 = smov 32  }
  0x23   :  { %23 = dma.hbm_to_vmem [thread:$0]  %s2073_s0, 1024, %s18_s30, [#allocation3], %s1873_s1, %s1873_s1, %s1874_s13  }
  0x24   :  { %s1875_s16 = smov [#allocation7]   ;;  %s1819_s20 = scalar_lea.hbm %s2075_s2, 128 }
  0x25   :  { %s42_s17 = sshll.u32 %s1875_s16, 4  ;;  %p1820_p2 = scmp.ne.s32.totalorder %s2075_s2, %s1819_s20  ;;  %s43_s17 = int_to_ptr.vmem [resolvable:$true] %s42_s17 }
  0x26   :  { %p1823_p3 = scmp.lt.u32.totalorder %s1819_s20, %s2075_s2 }
  0x28   :  { %p1825_p4 = pnand %p1823_p3, %p1820_p2 }
  0x2a   :  { %1828 = shalt.err (!%p1825_p4)
}
  0x2b   :  { %s1829_s27 = scalar_lea.vmem %s43_s17, 128  ;;  %p1834_p6 = scmp.lt.s32.totalorder %s43_s17, %s43_s17 }
  0x2c   :  { %p1830_p5 = scmp.ne.s32.totalorder %s43_s17, %s1829_s27  ;;  %p1835_p7 = scmp.lt.s32.totalorder %s1829_s27, %s1829_s27 }
  0x2e   :  { %p1836_p8 = por %p1835_p7, %p1834_p6 }
  0x30   :  { %p1837_p9 = pnand %p1836_p8, %p1830_p5 }
  0x32   :  { %1840 = shalt.err (!%p1837_p9)
}
  0x33   :  { %45 = dma.hbm_to_vmem [thread:$0]  %s2075_s2, 128, %s43_s17, [#allocation6]  }
  0x34   :  { %1863 = dma.done.wait [#allocation3], 1024  }
  0x35   :  { %1864 = vsyncadd [#allocation3], 4294966272 }
  0x36   :  { %1865 = dma.done.wait [#allocation6], 32896  }
  0x37   :  { %1866 = vsyncadd [#allocation6], 4294934400  ;;  %v58_v0 = vld [vmem:[#allocation5 + $0x8] sm:$0xff]  ;;  %v60_v1 = vld [vmem:[#allocation5 + $0x18] sm:$0xff] }
  0x38   :  { %v57_v2 = vld [vmem:[#allocation5] sm:$0xff]  ;;  %v314_v3 = vunpack.c.l.s8.bf16 %v58_v0  ;;  %v322_v4 = vunpack.c.h.s8.bf16 %v58_v0  ;;  %v316_v5 = vunpack.c.l.s8.bf16 %v60_v1  ;;  %v324_v6 = vunpack.c.h.s8.bf16 %v60_v1  ;;  %v59_v7 = vld [vmem:[#allocation5 + $0x10] sm:$0xff]  ;;  %v66_v10 = vld [vmem:[#allocation5 + $0x48] sm:$0xff] }
  0x39   :  { %v313_v8 = vunpack.c.l.s8.bf16 %v57_v2  ;;  %v315_v9 = vunpack.c.l.s8.bf16 %v59_v7  ;;  %v68_v11 = vld [vmem:[#allocation5 + $0x58] sm:$0xff]  ;;  %v321_v12 = vunpack.c.h.s8.bf16 %v57_v2  ;;  %v323_v13 = vunpack.c.h.s8.bf16 %v59_v7  ;;  %v65_v16 = vld [vmem:[#allocation5 + $0x40] sm:$0xff]  ;;  %v67_v17 = vld [vmem:[#allocation5 + $0x50] sm:$0xff] }
  0x3a   :  { %873 = vmatprep.subr.bf16.mxu0 %v314_v3  ;;  %1045 = vmatprep.subr.bf16.mxu1 %v316_v5  ;;  %v330_v14 = vunpack.c.l.s8.bf16 %v66_v10  ;;  %v332_v15 = vunpack.c.l.s8.bf16 %v68_v11  ;;  %v329_v18 = vunpack.c.l.s8.bf16 %v65_v16  ;;  %v331_v19 = vunpack.c.l.s8.bf16 %v67_v17  ;;  %v74_v22 = vld [vmem:[#allocation5 + $0x88] sm:$0xff]  ;;  %v76_v23 = vld [vmem:[#allocation5 + $0x98] sm:$0xff]  ;;  %v73_v28 = vld [vmem:[#allocation5 + $0x80] sm:$0xff] }
  0x3b   :  { %874 = vmatpush1.bf16.msra.mxu0 %v313_v8  ;;  %1046 = vmatpush1.bf16.msra.mxu1 %v315_v9  ;;  %v338_v20 = vunpack.c.h.s8.bf16 %v66_v10  ;;  %v340_v21 = vunpack.c.h.s8.bf16 %v68_v11  ;;  %v337_v24 = vunpack.c.h.s8.bf16 %v65_v16  ;;  %v339_v25 = vunpack.c.h.s8.bf16 %v67_v17  ;;  %v75_v29 = vld [vmem:[#allocation5 + $0x90] sm:$0xff]  ;;  %v1941_v30 = vld [vmem:[#allocation2] sm:$0xff]  ;;  %v82_v37 = vld [vmem:[#allocation5 + $0xc8] sm:$0xff] }
  0x3c   :  { %875 = vmatprep.subr.bf16.mxu0 %v322_v4  ;;  %1047 = vmatprep.subr.bf16.mxu1 %v324_v6  ;;  %v346_v26 = vunpack.c.l.s8.bf16 %v74_v22  ;;  %v348_v27 = vunpack.c.l.s8.bf16 %v76_v23  ;;  %v1943_v31 = vld [vmem:[#allocation2 + $0x20] sm:$0xff]  ;;  %v345_v32 = vunpack.c.l.s8.bf16 %v73_v28  ;;  %v347_v33 = vunpack.c.l.s8.bf16 %v75_v29  ;;  %v84_v38 = vld [vmem:[#allocation5 + $0xd8] sm:$0xff]  ;;  %v83_v44 = vld [vmem:[#allocation5 + $0xd0] sm:$0xff] }
  0x3d   :  { %v354_v34 = vunpack.c.h.s8.bf16 %v74_v22  ;;  %v356_v35 = vunpack.c.h.s8.bf16 %v76_v23  ;;  %v1947_v36 = vcombine.high %v1941_v30, %v1943_v31  ;;  %v353_v39 = vunpack.c.h.s8.bf16 %v73_v28  ;;  %v81_v43 = vld [vmem:[#allocation5 + $0xc0] sm:$0xff]  ;;  %v90_v49 = vld [vmem:[#allocation5 + $0x108] sm:$0xff]  ;;  %v92_v50 = vld [vmem:[#allocation5 + $0x118] sm:$0xff] }
  0x3e   :  { %v355_v40 = vunpack.c.h.s8.bf16 %v75_v29  ;;  %v362_v41 = vunpack.c.l.s8.bf16 %v82_v37  ;;  %v364_v42 = vunpack.c.l.s8.bf16 %v84_v38  ;;  %v361_v45 = vunpack.c.l.s8.bf16 %v81_v43  ;;  %v89_v55 = vld [vmem:[#allocation5 + $0x100] sm:$0xff]  ;;  %v91_v56 = vld [vmem:[#allocation5 + $0x110] sm:$0xff]  ;;  %v98_v61 = vld [vmem:[#allocation5 + $0x148] sm:$0xff] }
  0x3f   :  { %876 = vmatpush1.bf16.msra.mxu0 %v321_v12  ;;  %1048 = vmatpush1.bf16.msra.mxu1 %v323_v13  ;;  %v363_v46 = vunpack.c.l.s8.bf16 %v83_v44  ;;  %v370_v47 = vunpack.c.h.s8.bf16 %v82_v37  ;;  %v372_v48 = vunpack.c.h.s8.bf16 %v84_v38  ;;  %v369_v51 = vunpack.c.h.s8.bf16 %v81_v43  ;;  %v100_v62 = vld [vmem:[#allocation5 + $0x158] sm:$0xff]  ;;  %v97_v3 = vld [vmem:[#allocation5 + $0x140] sm:$0xff]  ;;  %v99_v4 = vld [vmem:[#allocation5 + $0x150] sm:$0xff] }
  0x40   :  { %877 = vmatprep.subr.bf16.mxu0 %v330_v14  ;;  %1049 = vmatprep.subr.bf16.mxu1 %v332_v15  ;;  %v371_v52 = vunpack.c.h.s8.bf16 %v83_v44  ;;  %v378_v53 = vunpack.c.l.s8.bf16 %v90_v49  ;;  %v380_v54 = vunpack.c.l.s8.bf16 %v92_v50  ;;  %v377_v57 = vunpack.c.l.s8.bf16 %v89_v55  ;;  %v106_v9 = vld [vmem:[#allocation5 + $0x188] sm:$0xff]  ;;  %v108_v10 = vld [vmem:[#allocation5 + $0x198] sm:$0xff]  ;;  %v105_v15 = vld [vmem:[#allocation5 + $0x180] sm:$0xff] }
  0x41   :  { %905 = vmatprep.mubr.bf16.mxu0 %v1947_v36  ;;  %1077 = vmatprep.mubr.bf16.mxu1 %v1947_v36  ;;  %v379_v58 = vunpack.c.l.s8.bf16 %v91_v56  ;;  %v386_v59 = vunpack.c.h.s8.bf16 %v90_v49  ;;  %v388_v60 = vunpack.c.h.s8.bf16 %v92_v50  ;;  %v385_v63 = vunpack.c.h.s8.bf16 %v89_v55  ;;  %v107_v16 = vld [vmem:[#allocation5 + $0x190] sm:$0xff]  ;;  %v116_v22 = vld [vmem:[#allocation5 + $0x1d8] sm:$0xff] }
  0x42   :  { %v387_v0 = vunpack.c.h.s8.bf16 %v91_v56  ;;  %v394_v1 = vunpack.c.l.s8.bf16 %v98_v61  ;;  %v396_v2 = vunpack.c.l.s8.bf16 %v100_v62  ;;  %v393_v5 = vunpack.c.l.s8.bf16 %v97_v3  ;;  %v115_v28 = vld [vmem:[#allocation5 + $0x1d0] sm:$0xff]  ;;  %v124_v37 = vld [vmem:[#allocation5 + $0x218] sm:$0xff]  ;;  %v129_v56 = vld [vmem:[#allocation5 + $0x240] sm:$0xff] }
  0x43   :  { %878 = vmatpush1.bf16.msra.mxu0 %v329_v18  ;;  %1050 = vmatpush1.bf16.msra.mxu1 %v331_v19  ;;  %v395_v6 = vunpack.c.l.s8.bf16 %v99_v4  ;;  %v402_v7 = vunpack.c.h.s8.bf16 %v98_v61  ;;  %v404_v8 = vunpack.c.h.s8.bf16 %v100_v62  ;;  %v401_v11 = vunpack.c.h.s8.bf16 %v97_v3  ;;  %v123_v43 = vld [vmem:[#allocation5 + $0x210] sm:$0xff]  ;;  %v138_v62 = vld [vmem:[#allocation5 + $0x288] sm:$0xff] }
  0x44   :  { %879 = vmatprep.subr.bf16.mxu0 %v338_v20  ;;  %1051 = vmatprep.subr.bf16.mxu1 %v340_v21  ;;  %v403_v12 = vunpack.c.h.s8.bf16 %v99_v4  ;;  %v410_v13 = vunpack.c.l.s8.bf16 %v106_v9  ;;  %v412_v14 = vunpack.c.l.s8.bf16 %v108_v10  ;;  %v409_v17 = vunpack.c.l.s8.bf16 %v105_v15  ;;  %v114_v21 = vld [vmem:[#allocation5 + $0x1c8] sm:$0xff]  ;;  %v137_v4 = vld [vmem:[#allocation5 + $0x280] sm:$0xff] }
  0x45   :  { %v411_v18 = vunpack.c.l.s8.bf16 %v107_v16  ;;  %v418_v19 = vunpack.c.h.s8.bf16 %v106_v9  ;;  %v420_v20 = vunpack.c.h.s8.bf16 %v108_v10  ;;  %v417_v23 = vunpack.c.h.s8.bf16 %v105_v15  ;;  %v146_v10 = vld [vmem:[#allocation5 + $0x2c8] sm:$0xff] }
  0x46   :  { %v1953_v44 = vcombine.low %v1941_v30, %v1943_v31  ;;  %v452_v50 = vunpack.c.h.s8.bf16 %v124_v37  ;;  %v451_v31 = vunpack.c.h.s8.bf16 %v123_v43 }
  0x47   :  { %880 = vmatpush1.bf16.msra.mxu0 %v337_v24  ;;  %1052 = vmatpush1.bf16.msra.mxu1 %v339_v25  ;;  %v419_v24 = vunpack.c.h.s8.bf16 %v107_v16  ;;  %v426_v25 = vunpack.c.l.s8.bf16 %v114_v21  ;;  %v145_v16 = vld [vmem:[#allocation5 + $0x2c0] sm:$0xff] }
  0x48   :  { %881 = vmatprep.subr.bf16.mxu0 %v346_v26  ;;  %1053 = vmatprep.subr.bf16.mxu1 %v348_v27  ;;  %v428_v26 = vunpack.c.l.s8.bf16 %v116_v22  ;;  %v113_v27 = vld [vmem:[#allocation5 + $0x1c0] sm:$0xff] }
  0x49   :  { %v425_v29 = vunpack.c.l.s8.bf16 %v113_v27  ;;  %v433_v38 = vunpack.c.h.s8.bf16 %v113_v27 }
  0x4b   :  { %882 = vmatpush1.bf16.msra.mxu0 %v345_v32  ;;  %1054 = vmatpush1.bf16.msra.mxu1 %v347_v33  ;;  %v427_v32 = vunpack.c.l.s8.bf16 %v115_v28  ;;  %v434_v33 = vunpack.c.h.s8.bf16 %v114_v21 }
  0x4c   :  { %883 = vmatprep.subr.bf16.mxu0 %v354_v34  ;;  %1055 = vmatprep.subr.bf16.mxu1 %v356_v35  ;;  %v436_v34 = vunpack.c.h.s8.bf16 %v116_v22  ;;  %v122_v35 = vld [vmem:[#allocation5 + $0x208] sm:$0xff] }
  0x4d   :  { %v450_v49 = vunpack.c.h.s8.bf16 %v122_v35  ;;  %v154_v22 = vld [vmem:[#allocation5 + $0x308] sm:$0xff] }
  0x4f   :  { %884 = vmatpush1.bf16.msra.mxu0 %v353_v39  ;;  %1056 = vmatpush1.bf16.msra.mxu1 %v355_v40  ;;  %v435_v39 = vunpack.c.h.s8.bf16 %v115_v28  ;;  %v442_v40 = vunpack.c.l.s8.bf16 %v122_v35  ;;  %v153_v28 = vld [vmem:[#allocation5 + $0x300] sm:$0xff] }
  0x50   :  { %885 = vmatprep.subr.bf16.mxu0 %v362_v41  ;;  %1057 = vmatprep.subr.bf16.mxu1 %v364_v42  ;;  %v444_v41 = vunpack.c.l.s8.bf16 %v124_v37  ;;  %v121_v42 = vld [vmem:[#allocation5 + $0x200] sm:$0xff]  ;;  %v162_v37 = vld [vmem:[#allocation5 + $0x348] sm:$0xff] }
  0x51   :  { %v449_v30 = vunpack.c.h.s8.bf16 %v121_v42 }
  0x53   :  { %886 = vmatpush1.bf16.msra.mxu0 %v361_v45  ;;  %1058 = vmatpush1.bf16.msra.mxu1 %v363_v46  ;;  %v1955_v45 = vld [vmem:[#allocation2 + $0x8] sm:$0xff] }
  0x54   :  { %887 = vmatprep.subr.bf16.mxu0 %v370_v47  ;;  %1059 = vmatprep.subr.bf16.mxu1 %v372_v48  ;;  %v1957_v46 = vld [vmem:[#allocation2 + $0x28] sm:$0xff]  ;;  %v441_v47 = vunpack.c.l.s8.bf16 %v121_v42  ;;  %v443_v48 = vunpack.c.l.s8.bf16 %v123_v43  ;;  %v161_v43 = vld [vmem:[#allocation5 + $0x340] sm:$0xff] }
  0x57   :  { %888 = vmatpush1.bf16.msra.mxu0 %v369_v51  ;;  %1060 = vmatpush1.bf16.msra.mxu1 %v371_v52  ;;  %v130_v51 = vld [vmem:[#allocation5 + $0x248] sm:$0xff]  ;;  %v132_v52 = vld [vmem:[#allocation5 + $0x258] sm:$0xff] }
  0x58   :  { %889 = vmatprep.subr.bf16.mxu0 %v378_v53  ;;  %1061 = vmatprep.subr.bf16.mxu1 %v380_v54  ;;  %v1961_v53 = vcombine.high %v1955_v45, %v1957_v46  ;;  %v458_v54 = vunpack.c.l.s8.bf16 %v130_v51  ;;  %v460_v55 = vunpack.c.l.s8.bf16 %v132_v52  ;;  %v468_v61 = vunpack.c.h.s8.bf16 %v132_v52  ;;  %v170_v52 = vld [vmem:[#allocation5 + $0x388] sm:$0xff] }
  0x5b   :  { %890 = vmatpush1.bf16.msra.mxu0 %v377_v57  ;;  %1062 = vmatpush1.bf16.msra.mxu1 %v379_v58  ;;  %v131_v57 = vld [vmem:[#allocation5 + $0x250] sm:$0xff]  ;;  %v457_v58 = vunpack.c.l.s8.bf16 %v129_v56 }
  0x5c   :  { %891 = vmatprep.subr.bf16.mxu0 %v386_v59  ;;  %1063 = vmatprep.subr.bf16.mxu1 %v388_v60  ;;  %v459_v59 = vunpack.c.l.s8.bf16 %v131_v57  ;;  %v466_v60 = vunpack.c.h.s8.bf16 %v130_v51 }
  0x5f   :  { %892 = vmatpush1.bf16.msra.mxu0 %v385_v63  ;;  %1064 = vmatpush1.bf16.msra.mxu1 %v387_v0  ;;  %v140_v63 = vld [vmem:[#allocation5 + $0x298] sm:$0xff]  ;;  %v465_v0 = vunpack.c.h.s8.bf16 %v129_v56 }
  0x60   :  { %893 = vmatprep.subr.bf16.mxu0 %v394_v1  ;;  %1065 = vmatprep.subr.bf16.mxu1 %v396_v2  ;;  %v467_v1 = vunpack.c.h.s8.bf16 %v131_v57  ;;  %v474_v2 = vunpack.c.l.s8.bf16 %v138_v62  ;;  %v476_v3 = vunpack.c.l.s8.bf16 %v140_v63  ;;  %v484_v9 = vunpack.c.h.s8.bf16 %v140_v63  ;;  %v169_v57 = vld [vmem:[#allocation5 + $0x380] sm:$0xff]  ;;  %v178_v63 = vld [vmem:[#allocation5 + $0x3c8] sm:$0xff] }
  0x63   :  { %894 = vmatpush1.bf16.msra.mxu0 %v393_v5  ;;  %1066 = vmatpush1.bf16.msra.mxu1 %v395_v6  ;;  %v139_v5 = vld [vmem:[#allocation5 + $0x290] sm:$0xff]  ;;  %v473_v6 = vunpack.c.l.s8.bf16 %v137_v4 }
  0x64   :  { %895 = vmatprep.subr.bf16.mxu0 %v402_v7  ;;  %1067 = vmatprep.subr.bf16.mxu1 %v404_v8  ;;  %v475_v7 = vunpack.c.l.s8.bf16 %v139_v5  ;;  %v482_v8 = vunpack.c.h.s8.bf16 %v138_v62 }
  0x67   :  { %896 = vmatpush1.bf16.msra.mxu0 %v401_v11  ;;  %1068 = vmatpush1.bf16.msra.mxu1 %v403_v12  ;;  %v148_v11 = vld [vmem:[#allocation5 + $0x2d8] sm:$0xff]  ;;  %v481_v12 = vunpack.c.h.s8.bf16 %v137_v4 }
  0x68   :  { %897 = vmatprep.subr.bf16.mxu0 %v410_v13  ;;  %1069 = vmatprep.subr.bf16.mxu1 %v412_v14  ;;  %v483_v13 = vunpack.c.h.s8.bf16 %v139_v5  ;;  %v490_v14 = vunpack.c.l.s8.bf16 %v146_v10  ;;  %v492_v15 = vunpack.c.l.s8.bf16 %v148_v11  ;;  %v500_v21 = vunpack.c.h.s8.bf16 %v148_v11  ;;  %v177_v5 = vld [vmem:[#allocation5 + $0x3c0] sm:$0xff]  ;;  %v186_v11 = vld [vmem:[#allocation5 + $0x408] sm:$0xff] }
  0x6b   :  { %898 = vmatpush1.bf16.msra.mxu0 %v409_v17  ;;  %1070 = vmatpush1.bf16.msra.mxu1 %v411_v18  ;;  %v147_v17 = vld [vmem:[#allocation5 + $0x2d0] sm:$0xff]  ;;  %v489_v18 = vunpack.c.l.s8.bf16 %v145_v16 }
  0x6c   :  { %899 = vmatprep.subr.bf16.mxu0 %v418_v19  ;;  %1071 = vmatprep.subr.bf16.mxu1 %v420_v20  ;;  %v491_v19 = vunpack.c.l.s8.bf16 %v147_v17  ;;  %v498_v20 = vunpack.c.h.s8.bf16 %v146_v10 }
  0x6f   :  { %900 = vmatpush1.bf16.msra.mxu0 %v417_v23  ;;  %1072 = vmatpush1.bf16.msra.mxu1 %v419_v24  ;;  %v156_v23 = vld [vmem:[#allocation5 + $0x318] sm:$0xff]  ;;  %v497_v24 = vunpack.c.h.s8.bf16 %v145_v16 }
  0x70   :  { %901 = vmatprep.subr.bf16.mxu0 %v426_v25  ;;  %1073 = vmatprep.subr.bf16.mxu1 %v428_v26  ;;  %v499_v25 = vunpack.c.h.s8.bf16 %v147_v17  ;;  %v506_v26 = vunpack.c.l.s8.bf16 %v154_v22  ;;  %v508_v27 = vunpack.c.l.s8.bf16 %v156_v23  ;;  %v516_v35 = vunpack.c.h.s8.bf16 %v156_v23  ;;  %v185_v17 = vld [vmem:[#allocation5 + $0x400] sm:$0xff] }
  0x73   :  { %902 = vmatpush1.bf16.msra.mxu0 %v425_v29  ;;  %1074 = vmatpush1.bf16.msra.mxu1 %v427_v32  ;;  %v155_v29 = vld [vmem:[#allocation5 + $0x310] sm:$0xff]  ;;  %v505_v32 = vunpack.c.l.s8.bf16 %v153_v28 }
  0x74   :  { %903 = vmatprep.subr.bf16.mxu0 %v434_v33  ;;  %1075 = vmatprep.subr.bf16.mxu1 %v436_v34  ;;  %v507_v33 = vunpack.c.l.s8.bf16 %v155_v29  ;;  %v514_v34 = vunpack.c.h.s8.bf16 %v154_v22  ;;  %v569_v22 = vunpack.c.l.s8.bf16 %v185_v17 }
  0x77   :  { %904 = vmatpush1.bf16.msra.mxu0 %v433_v38  ;;  %1076 = vmatpush1.bf16.msra.mxu1 %v435_v39  ;;  %v164_v38 = vld [vmem:[#allocation5 + $0x358] sm:$0xff]  ;;  %v513_v39 = vunpack.c.h.s8.bf16 %v153_v28 }
  0x78   :  { %916 = vmatprep.subr.bf16.mxu0 %v442_v40  ;;  %1088 = vmatprep.subr.bf16.mxu1 %v444_v41  ;;  %v515_v40 = vunpack.c.h.s8.bf16 %v155_v29  ;;  %v522_v41 = vunpack.c.l.s8.bf16 %v162_v37  ;;  %v524_v42 = vunpack.c.l.s8.bf16 %v164_v38  ;;  %v532_v51 = vunpack.c.h.s8.bf16 %v164_v38 }
  0x7a   :  { %906 = vmatmul.mubr.bf16.vlgmr.msra.gmra.mrb[0].mxu0 %v1953_v44  ;;  %1078 = vmatmul.mubr.bf16.vlgmr.msra.gmra.mrb[0].mxu1 %v1953_v44 }
  0x7b   :  { %917 = vmatpush1.bf16.msra.mxu0 %v441_v47  ;;  %1089 = vmatpush1.bf16.msra.mxu1 %v443_v48  ;;  %v163_v47 = vld [vmem:[#allocation5 + $0x350] sm:$0xff]  ;;  %v521_v48 = vunpack.c.l.s8.bf16 %v161_v43 }
  0x7c   :  { %918 = vmatprep.subr.bf16.mxu0 %v450_v49  ;;  %1090 = vmatprep.subr.bf16.mxu1 %v452_v50  ;;  %v523_v49 = vunpack.c.l.s8.bf16 %v163_v47  ;;  %v530_v50 = vunpack.c.h.s8.bf16 %v162_v37 }
  0x7d   :  { %948 = vmatprep.mubr.bf16.mxu0 %v1961_v53  ;;  %1120 = vmatprep.mubr.bf16.mxu1 %v1961_v53 }
  0x7f   :  { %919 = vmatpush1.bf16.msra.mxu0 %v449_v30  ;;  %1091 = vmatpush1.bf16.msra.mxu1 %v451_v31  ;;  %v172_v30 = vld [vmem:[#allocation5 + $0x398] sm:$0xff]  ;;  %v529_v31 = vunpack.c.h.s8.bf16 %v161_v43 }
  0x80   :  { %920 = vmatprep.subr.bf16.mxu0 %v458_v54  ;;  %1092 = vmatprep.subr.bf16.mxu1 %v460_v55  ;;  %v531_v54 = vunpack.c.h.s8.bf16 %v163_v47  ;;  %v538_v55 = vunpack.c.l.s8.bf16 %v170_v52  ;;  %v540_v56 = vunpack.c.l.s8.bf16 %v172_v30  ;;  %v548_v62 = vunpack.c.h.s8.bf16 %v172_v30 }
  0x83   :  { %921 = vmatpush1.bf16.msra.mxu0 %v457_v58  ;;  %1093 = vmatpush1.bf16.msra.mxu1 %v459_v59  ;;  %v171_v58 = vld [vmem:[#allocation5 + $0x390] sm:$0xff]  ;;  %v537_v59 = vunpack.c.l.s8.bf16 %v169_v57 }
  0x84   :  { %922 = vmatprep.subr.bf16.mxu0 %v466_v60  ;;  %1094 = vmatprep.subr.bf16.mxu1 %v468_v61  ;;  %v539_v60 = vunpack.c.l.s8.bf16 %v171_v58  ;;  %v546_v61 = vunpack.c.h.s8.bf16 %v170_v52 }
  0x87   :  { %923 = vmatpush1.bf16.msra.mxu0 %v465_v0  ;;  %1095 = vmatpush1.bf16.msra.mxu1 %v467_v1  ;;  %v180_v0 = vld [vmem:[#allocation5 + $0x3d8] sm:$0xff]  ;;  %v545_v1 = vunpack.c.h.s8.bf16 %v169_v57 }
  0x88   :  { %924 = vmatprep.subr.bf16.mxu0 %v474_v2  ;;  %1096 = vmatprep.subr.bf16.mxu1 %v476_v3  ;;  %v547_v2 = vunpack.c.h.s8.bf16 %v171_v58  ;;  %v554_v3 = vunpack.c.l.s8.bf16 %v178_v63  ;;  %v556_v4 = vunpack.c.l.s8.bf16 %v180_v0  ;;  %v564_v10 = vunpack.c.h.s8.bf16 %v180_v0 }
  0x8b   :  { %925 = vmatpush1.bf16.msra.mxu0 %v473_v6  ;;  %1097 = vmatpush1.bf16.msra.mxu1 %v475_v7  ;;  %v179_v6 = vld [vmem:[#allocation5 + $0x3d0] sm:$0xff]  ;;  %v553_v7 = vunpack.c.l.s8.bf16 %v177_v5 }
  0x8c   :  { %926 = vmatprep.subr.bf16.mxu0 %v482_v8  ;;  %1098 = vmatprep.subr.bf16.mxu1 %v484_v9  ;;  %v555_v8 = vunpack.c.l.s8.bf16 %v179_v6  ;;  %v562_v9 = vunpack.c.h.s8.bf16 %v178_v63 }
  0x8f   :  { %927 = vmatpush1.bf16.msra.mxu0 %v481_v12  ;;  %1099 = vmatpush1.bf16.msra.mxu1 %v483_v13  ;;  %v188_v12 = vld [vmem:[#allocation5 + $0x418] sm:$0xff]  ;;  %v561_v13 = vunpack.c.h.s8.bf16 %v177_v5 }
  0x90   :  { %928 = vmatprep.subr.bf16.mxu0 %v490_v14  ;;  %1100 = vmatprep.subr.bf16.mxu1 %v492_v15  ;;  %v563_v14 = vunpack.c.h.s8.bf16 %v179_v6  ;;  %v570_v15 = vunpack.c.l.s8.bf16 %v186_v11  ;;  %v572_v16 = vunpack.c.l.s8.bf16 %v188_v12 }
  0x93   :  { %929 = vmatpush1.bf16.msra.mxu0 %v489_v18  ;;  %1101 = vmatpush1.bf16.msra.mxu1 %v491_v19  ;;  %v187_v18 = vld [vmem:[#allocation5 + $0x410] sm:$0xff]  ;;  %v1969_v19 = vcombine.low %v1955_v45, %v1957_v46  ;;  %v577_v45 = vunpack.c.h.s8.bf16 %v185_v17 }
  0x94   :  { %930 = vmatprep.subr.bf16.mxu0 %v498_v20  ;;  %1102 = vmatprep.subr.bf16.mxu1 %v500_v21  ;;  %v1971_v20 = vld [vmem:[#allocation2 + $0x10] sm:$0xff]  ;;  %v571_v23 = vunpack.c.l.s8.bf16 %v187_v18  ;;  %v579_v46 = vunpack.c.h.s8.bf16 %v187_v18 }
  0x95   :  { %v1973_v21 = vld [vmem:[#allocation2 + $0x30] sm:$0xff] }
  0x96   :  { %v1977_v28 = vcombine.high %v1971_v20, %v1973_v21 }
  0x97   :  { %931 = vmatpush1.bf16.msra.mxu0 %v497_v24  ;;  %1103 = vmatpush1.bf16.msra.mxu1 %v499_v25  ;;  %v578_v24 = vunpack.c.h.s8.bf16 %v186_v11  ;;  %v580_v25 = vunpack.c.h.s8.bf16 %v188_v12 }
  0x98   :  { %932 = vmatprep.subr.bf16.mxu0 %v506_v26  ;;  %1104 = vmatprep.subr.bf16.mxu1 %v508_v27  ;;  %v194_v26 = vld [vmem:[#allocation5 + $0x448] sm:$0xff]  ;;  %v196_v27 = vld [vmem:[#allocation5 + $0x458] sm:$0xff] }
  0x99   :  { %v586_v29 = vunpack.c.l.s8.bf16 %v194_v26  ;;  %v594_v38 = vunpack.c.h.s8.bf16 %v194_v26 }
  0x9b   :  { %933 = vmatpush1.bf16.msra.mxu0 %v505_v32  ;;  %1105 = vmatpush1.bf16.msra.mxu1 %v507_v33  ;;  %v588_v32 = vunpack.c.l.s8.bf16 %v196_v27  ;;  %v193_v33 = vld [vmem:[#allocation5 + $0x440] sm:$0xff] }
  0x9c   :  { %934 = vmatprep.subr.bf16.mxu0 %v514_v34  ;;  %1106 = vmatprep.subr.bf16.mxu1 %v516_v35  ;;  %v195_v34 = vld [vmem:[#allocation5 + $0x450] sm:$0xff]  ;;  %v585_v35 = vunpack.c.l.s8.bf16 %v193_v33 }
  0x9d   :  { %v587_v37 = vunpack.c.l.s8.bf16 %v195_v34  ;;  %v595_v43 = vunpack.c.h.s8.bf16 %v195_v34 }
  0x9f   :  { %935 = vmatpush1.bf16.msra.mxu0 %v513_v39  ;;  %1107 = vmatpush1.bf16.msra.mxu1 %v515_v40  ;;  %v596_v39 = vunpack.c.h.s8.bf16 %v196_v27  ;;  %v202_v40 = vld [vmem:[#allocation5 + $0x488] sm:$0xff] }
  0xa0   :  { %936 = vmatprep.subr.bf16.mxu0 %v522_v41  ;;  %1108 = vmatprep.subr.bf16.mxu1 %v524_v42  ;;  %v204_v41 = vld [vmem:[#allocation5 + $0x498] sm:$0xff]  ;;  %v593_v42 = vunpack.c.h.s8.bf16 %v193_v33  ;;  %v602_v47 = vunpack.c.l.s8.bf16 %v202_v40  ;;  %v610_v30 = vunpack.c.h.s8.bf16 %v202_v40 }
  0xa3   :  { %937 = vmatpush1.bf16.msra.mxu0 %v521_v48  ;;  %1109 = vmatpush1.bf16.msra.mxu1 %v523_v49  ;;  %v604_v48 = vunpack.c.l.s8.bf16 %v204_v41  ;;  %v201_v49 = vld [vmem:[#allocation5 + $0x480] sm:$0xff] }
  0xa4   :  { %938 = vmatprep.subr.bf16.mxu0 %v530_v50  ;;  %1110 = vmatprep.subr.bf16.mxu1 %v532_v51  ;;  %v203_v50 = vld [vmem:[#allocation5 + $0x490] sm:$0xff]  ;;  %v601_v51 = vunpack.c.l.s8.bf16 %v201_v49 }
  0xa5   :  { %v603_v52 = vunpack.c.l.s8.bf16 %v203_v50  ;;  %v611_v57 = vunpack.c.h.s8.bf16 %v203_v50 }
  0xa7   :  { %939 = vmatpush1.bf16.msra.mxu0 %v529_v31  ;;  %1111 = vmatpush1.bf16.msra.mxu1 %v531_v54  ;;  %v612_v31 = vunpack.c.h.s8.bf16 %v204_v41  ;;  %v210_v54 = vld [vmem:[#allocation5 + $0x4c8] sm:$0xff] }
  0xa8   :  { %940 = vmatprep.subr.bf16.mxu0 %v538_v55  ;;  %1112 = vmatprep.subr.bf16.mxu1 %v540_v56  ;;  %v212_v55 = vld [vmem:[#allocation5 + $0x4d8] sm:$0xff]  ;;  %v609_v56 = vunpack.c.h.s8.bf16 %v201_v49  ;;  %v618_v58 = vunpack.c.l.s8.bf16 %v210_v54  ;;  %v626_v0 = vunpack.c.h.s8.bf16 %v210_v54 }
  0xab   :  { %941 = vmatpush1.bf16.msra.mxu0 %v537_v59  ;;  %1113 = vmatpush1.bf16.msra.mxu1 %v539_v60  ;;  %v620_v59 = vunpack.c.l.s8.bf16 %v212_v55  ;;  %v209_v60 = vld [vmem:[#allocation5 + $0x4c0] sm:$0xff] }
  0xac   :  { %942 = vmatprep.subr.bf16.mxu0 %v546_v61  ;;  %1114 = vmatprep.subr.bf16.mxu1 %v548_v62  ;;  %v211_v61 = vld [vmem:[#allocation5 + $0x4d0] sm:$0xff]  ;;  %v617_v62 = vunpack.c.l.s8.bf16 %v209_v60 }
  0xad   :  { %v619_v63 = vunpack.c.l.s8.bf16 %v211_v61  ;;  %v627_v5 = vunpack.c.h.s8.bf16 %v211_v61 }
  0xaf   :  { %943 = vmatpush1.bf16.msra.mxu0 %v545_v1  ;;  %1115 = vmatpush1.bf16.msra.mxu1 %v547_v2  ;;  %v628_v1 = vunpack.c.h.s8.bf16 %v212_v55  ;;  %v218_v2 = vld [vmem:[#allocation5 + $0x508] sm:$0xff] }
  0xb0   :  { %944 = vmatprep.subr.bf16.mxu0 %v554_v3  ;;  %1116 = vmatprep.subr.bf16.mxu1 %v556_v4  ;;  %v220_v3 = vld [vmem:[#allocation5 + $0x518] sm:$0xff]  ;;  %v625_v4 = vunpack.c.h.s8.bf16 %v209_v60  ;;  %v634_v6 = vunpack.c.l.s8.bf16 %v218_v2  ;;  %v642_v12 = vunpack.c.h.s8.bf16 %v218_v2 }
  0xb1   :  { %v1987_v2 = vld [vmem:[#allocation2 + $0x18] sm:$0xff] }
  0xb3   :  { %945 = vmatpush1.bf16.msra.mxu0 %v553_v7  ;;  %1117 = vmatpush1.bf16.msra.mxu1 %v555_v8  ;;  %v636_v7 = vunpack.c.l.s8.bf16 %v220_v3  ;;  %v217_v8 = vld [vmem:[#allocation5 + $0x500] sm:$0xff] }
  0xb4   :  { %946 = vmatprep.subr.bf16.mxu0 %v562_v9  ;;  %1118 = vmatprep.subr.bf16.mxu1 %v564_v10  ;;  %v219_v9 = vld [vmem:[#allocation5 + $0x510] sm:$0xff]  ;;  %v633_v10 = vunpack.c.l.s8.bf16 %v217_v8 }
  0xb5   :  { %v635_v11 = vunpack.c.l.s8.bf16 %v219_v9  ;;  %v643_v17 = vunpack.c.h.s8.bf16 %v219_v9  ;;  %v260_v9 = vld [vmem:[#allocation5 + $0x658] sm:$0xff] }
  0xb7   :  { %947 = vmatpush1.bf16.msra.mxu0 %v561_v13  ;;  %1119 = vmatpush1.bf16.msra.mxu1 %v563_v14  ;;  %v644_v13 = vunpack.c.h.s8.bf16 %v220_v3  ;;  %v226_v14 = vld [vmem:[#allocation5 + $0x548] sm:$0xff]  ;;  %v1989_v3 = vld [vmem:[#allocation2 + $0x38] sm:$0xff] }
  0xb8   :  { %959 = vmatprep.subr.bf16.mxu0 %v570_v15  ;;  %1131 = vmatprep.subr.bf16.mxu1 %v572_v16  ;;  %v228_v15 = vld [vmem:[#allocation5 + $0x558] sm:$0xff]  ;;  %v641_v16 = vunpack.c.h.s8.bf16 %v217_v8  ;;  %v650_v18 = vunpack.c.l.s8.bf16 %v226_v14  ;;  %v658_v27 = vunpack.c.h.s8.bf16 %v226_v14  ;;  %v258_v8 = vld [vmem:[#allocation5 + $0x648] sm:$0xff]  ;;  %v259_v14 = vld [vmem:[#allocation5 + $0x650] sm:$0xff] }
  0xba   :  { %949 = vmatmul.mubr.bf16.vlgmr.msra.gmra.mrb[0].mxu0 %v1969_v19  ;;  %1121 = vmatmul.mubr.bf16.vlgmr.msra.gmra.mrb[0].mxu1 %v1969_v19 }
  0xbb   :  { %960 = vmatpush1.bf16.msra.mxu0 %v569_v22  ;;  %1132 = vmatpush1.bf16.msra.mxu1 %v571_v23  ;;  %v652_v22 = vunpack.c.l.s8.bf16 %v228_v15  ;;  %v225_v23 = vld [vmem:[#allocation5 + $0x540] sm:$0xff] }
  0xbc   :  { %961 = vmatprep.subr.bf16.mxu0 %v578_v24  ;;  %1133 = vmatprep.subr.bf16.mxu1 %v580_v25  ;;  %v227_v24 = vld [vmem:[#allocation5 + $0x550] sm:$0xff]  ;;  %v649_v25 = vunpack.c.l.s8.bf16 %v225_v23 }
  0xbd   :  { %991 = vmatprep.mubr.bf16.mxu0 %v1977_v28  ;;  %1163 = vmatprep.mubr.bf16.mxu1 %v1977_v28  ;;  %v651_v26 = vunpack.c.l.s8.bf16 %v227_v24  ;;  %v659_v33 = vunpack.c.h.s8.bf16 %v227_v24 }
  0xbf   :  { %962 = vmatpush1.bf16.msra.mxu0 %v577_v45  ;;  %1134 = vmatpush1.bf16.msra.mxu1 %v579_v46  ;;  %v660_v45 = vunpack.c.h.s8.bf16 %v228_v15  ;;  %v234_v46 = vld [vmem:[#allocation5 + $0x588] sm:$0xff] }
  0xc0   :  { %963 = vmatprep.subr.bf16.mxu0 %v586_v29  ;;  %1135 = vmatprep.subr.bf16.mxu1 %v588_v32  ;;  %v236_v29 = vld [vmem:[#allocation5 + $0x598] sm:$0xff]  ;;  %v657_v32 = vunpack.c.h.s8.bf16 %v225_v23  ;;  %v666_v34 = vunpack.c.l.s8.bf16 %v234_v46  ;;  %v674_v41 = vunpack.c.h.s8.bf16 %v234_v46  ;;  %v267_v46 = vld [vmem:[#allocation5 + $0x690] sm:$0xff] }
  0xc1   :  { %v268_v23 = vld [vmem:[#allocation5 + $0x698] sm:$0xff] }
  0xc3   :  { %964 = vmatpush1.bf16.msra.mxu0 %v585_v35  ;;  %1136 = vmatpush1.bf16.msra.mxu1 %v587_v37  ;;  %v668_v35 = vunpack.c.l.s8.bf16 %v236_v29  ;;  %v233_v37 = vld [vmem:[#allocation5 + $0x580] sm:$0xff] }
  0xc4   :  { %965 = vmatprep.subr.bf16.mxu0 %v594_v38  ;;  %1137 = vmatprep.subr.bf16.mxu1 %v596_v39  ;;  %v235_v38 = vld [vmem:[#allocation5 + $0x590] sm:$0xff]  ;;  %v665_v39 = vunpack.c.l.s8.bf16 %v233_v37 }
  0xc5   :  { %v667_v40 = vunpack.c.l.s8.bf16 %v235_v38  ;;  %v675_v49 = vunpack.c.h.s8.bf16 %v235_v38 }
  0xc7   :  { %966 = vmatpush1.bf16.msra.mxu0 %v593_v42  ;;  %1138 = vmatpush1.bf16.msra.mxu1 %v595_v43  ;;  %v676_v42 = vunpack.c.h.s8.bf16 %v236_v29  ;;  %v242_v43 = vld [vmem:[#allocation5 + $0x5c8] sm:$0xff] }
  0xc8   :  { %967 = vmatprep.subr.bf16.mxu0 %v602_v47  ;;  %1139 = vmatprep.subr.bf16.mxu1 %v604_v48  ;;  %v244_v47 = vld [vmem:[#allocation5 + $0x5d8] sm:$0xff]  ;;  %v673_v48 = vunpack.c.h.s8.bf16 %v233_v37  ;;  %v682_v50 = vunpack.c.l.s8.bf16 %v242_v43  ;;  %v690_v55 = vunpack.c.h.s8.bf16 %v242_v43  ;;  %v275_v43 = vld [vmem:[#allocation5 + $0x6d0] sm:$0xff] }
  0xc9   :  { %v276_v37 = vld [vmem:[#allocation5 + $0x6d8] sm:$0xff] }
  0xcb   :  { %968 = vmatpush1.bf16.msra.mxu0 %v601_v51  ;;  %1140 = vmatpush1.bf16.msra.mxu1 %v603_v52  ;;  %v684_v51 = vunpack.c.l.s8.bf16 %v244_v47  ;;  %v241_v52 = vld [vmem:[#allocation5 + $0x5c0] sm:$0xff] }
  0xcc   :  { %969 = vmatprep.subr.bf16.mxu0 %v610_v30  ;;  %1141 = vmatprep.subr.bf16.mxu1 %v612_v31  ;;  %v243_v30 = vld [vmem:[#allocation5 + $0x5d0] sm:$0xff]  ;;  %v681_v31 = vunpack.c.l.s8.bf16 %v241_v52 }
  0xcd   :  { %v683_v54 = vunpack.c.l.s8.bf16 %v243_v30  ;;  %v691_v60 = vunpack.c.h.s8.bf16 %v243_v30 }
  0xcf   :  { %970 = vmatpush1.bf16.msra.mxu0 %v609_v56  ;;  %1142 = vmatpush1.bf16.msra.mxu1 %v611_v57  ;;  %v692_v56 = vunpack.c.h.s8.bf16 %v244_v47  ;;  %v250_v57 = vld [vmem:[#allocation5 + $0x608] sm:$0xff] }
  0xd0   :  { %971 = vmatprep.subr.bf16.mxu0 %v618_v58  ;;  %1143 = vmatprep.subr.bf16.mxu1 %v620_v59  ;;  %v252_v58 = vld [vmem:[#allocation5 + $0x618] sm:$0xff]  ;;  %v689_v59 = vunpack.c.h.s8.bf16 %v241_v52  ;;  %v698_v61 = vunpack.c.l.s8.bf16 %v250_v57 }
  0xd1   :  { %v284_v52 = vld [vmem:[#allocation5 + $0x718] sm:$0xff] }
  0xd3   :  { %972 = vmatpush1.bf16.msra.mxu0 %v617_v62  ;;  %1144 = vmatpush1.bf16.msra.mxu1 %v619_v63  ;;  %v700_v62 = vunpack.c.l.s8.bf16 %v252_v58  ;;  %v249_v63 = vld [vmem:[#allocation5 + $0x600] sm:$0xff] }
  0xd4   :  { %973 = vmatprep.subr.bf16.mxu0 %v626_v0  ;;  %1145 = vmatprep.subr.bf16.mxu1 %v628_v1  ;;  %v251_v0 = vld [vmem:[#allocation5 + $0x610] sm:$0xff]  ;;  %v1985_v1 = vcombine.low %v1971_v20, %v1973_v21  ;;  %v705_v20 = vunpack.c.h.s8.bf16 %v249_v63 }
  0xd5   :  { %v707_v21 = vunpack.c.h.s8.bf16 %v251_v0 }
  0xd7   :  { %974 = vmatpush1.bf16.msra.mxu0 %v625_v4  ;;  %1146 = vmatpush1.bf16.msra.mxu1 %v627_v5  ;;  %v697_v4 = vunpack.c.l.s8.bf16 %v249_v63  ;;  %v699_v5 = vunpack.c.l.s8.bf16 %v251_v0  ;;  %v292_v63 = vld [vmem:[#allocation5 + $0x758] sm:$0xff] }
  0xd8   :  { %975 = vmatprep.subr.bf16.mxu0 %v634_v6  ;;  %1147 = vmatprep.subr.bf16.mxu1 %v636_v7  ;;  %v706_v6 = vunpack.c.h.s8.bf16 %v250_v57  ;;  %v708_v7 = vunpack.c.h.s8.bf16 %v252_v58  ;;  %v283_v57 = vld [vmem:[#allocation5 + $0x710] sm:$0xff] }
  0xdb   :  { %976 = vmatpush1.bf16.msra.mxu0 %v633_v10  ;;  %1148 = vmatpush1.bf16.msra.mxu1 %v635_v11  ;;  %v1993_v10 = vcombine.high %v1987_v2, %v1989_v3  ;;  %v714_v11 = vunpack.c.l.s8.bf16 %v258_v8 }
  0xdc   :  { %977 = vmatprep.subr.bf16.mxu0 %v642_v12  ;;  %1149 = vmatprep.subr.bf16.mxu1 %v644_v13  ;;  %v716_v12 = vunpack.c.l.s8.bf16 %v260_v9  ;;  %v257_v13 = vld [vmem:[#allocation5 + $0x640] sm:$0xff] }
  0xdd   :  { %v713_v15 = vunpack.c.l.s8.bf16 %v257_v13  ;;  %v721_v24 = vunpack.c.h.s8.bf16 %v257_v13  ;;  %v300_v13 = vld [vmem:[#allocation5 + $0x798] sm:$0xff] }
  0xdf   :  { %978 = vmatpush1.bf16.msra.mxu0 %v641_v16  ;;  %1150 = vmatpush1.bf16.msra.mxu1 %v643_v17  ;;  %v715_v16 = vunpack.c.l.s8.bf16 %v259_v14  ;;  %v722_v17 = vunpack.c.h.s8.bf16 %v258_v8  ;;  %v291_v8 = vld [vmem:[#allocation5 + $0x750] sm:$0xff] }
  0xe0   :  { %979 = vmatprep.subr.bf16.mxu0 %v650_v18  ;;  %1151 = vmatprep.subr.bf16.mxu1 %v652_v22  ;;  %v724_v18 = vunpack.c.h.s8.bf16 %v260_v9  ;;  %v266_v22 = vld [vmem:[#allocation5 + $0x688] sm:$0xff] }
  0xe3   :  { %980 = vmatpush1.bf16.msra.mxu0 %v649_v25  ;;  %1152 = vmatpush1.bf16.msra.mxu1 %v651_v26  ;;  %v723_v25 = vunpack.c.h.s8.bf16 %v259_v14  ;;  %v730_v26 = vunpack.c.l.s8.bf16 %v266_v22 }
  0xe4   :  { %981 = vmatprep.subr.bf16.mxu0 %v658_v27  ;;  %1153 = vmatprep.subr.bf16.mxu1 %v660_v45  ;;  %v732_v27 = vunpack.c.l.s8.bf16 %v268_v23  ;;  %v265_v45 = vld [vmem:[#allocation5 + $0x680] sm:$0xff] }
  0xe5   :  { %v729_v29 = vunpack.c.l.s8.bf16 %v265_v45  ;;  %v737_v38 = vunpack.c.h.s8.bf16 %v265_v45  ;;  %v308_v45 = vld [vmem:[#allocation5 + $0x7d8] sm:$0xff] }
  0xe7   :  { %982 = vmatpush1.bf16.msra.mxu0 %v657_v32  ;;  %1154 = vmatpush1.bf16.msra.mxu1 %v659_v33  ;;  %v731_v32 = vunpack.c.l.s8.bf16 %v267_v46  ;;  %v738_v33 = vunpack.c.h.s8.bf16 %v266_v22  ;;  %v299_v22 = vld [vmem:[#allocation5 + $0x790] sm:$0xff] }
  0xe8   :  { %983 = vmatprep.subr.bf16.mxu0 %v666_v34  ;;  %1155 = vmatprep.subr.bf16.mxu1 %v668_v35  ;;  %v740_v34 = vunpack.c.h.s8.bf16 %v268_v23  ;;  %v274_v35 = vld [vmem:[#allocation5 + $0x6c8] sm:$0xff] }
  0xeb   :  { %984 = vmatpush1.bf16.msra.mxu0 %v665_v39  ;;  %1156 = vmatpush1.bf16.msra.mxu1 %v667_v40  ;;  %v739_v39 = vunpack.c.h.s8.bf16 %v267_v46  ;;  %v746_v40 = vunpack.c.l.s8.bf16 %v274_v35 }
  0xec   :  { %985 = vmatprep.subr.bf16.mxu0 %v674_v41  ;;  %1157 = vmatprep.subr.bf16.mxu1 %v676_v42  ;;  %v748_v41 = vunpack.c.l.s8.bf16 %v276_v37  ;;  %v273_v42 = vld [vmem:[#allocation5 + $0x6c0] sm:$0xff] }
  0xed   :  { %v745_v47 = vunpack.c.l.s8.bf16 %v273_v42  ;;  %v753_v30 = vunpack.c.h.s8.bf16 %v273_v42  ;;  %v64_v42 = vld [vmem:[#allocation5 + $0x38] sm:$0xff] }
  0xef   :  { %986 = vmatpush1.bf16.msra.mxu0 %v673_v48  ;;  %1158 = vmatpush1.bf16.msra.mxu1 %v675_v49  ;;  %v747_v48 = vunpack.c.l.s8.bf16 %v275_v43  ;;  %v754_v49 = vunpack.c.h.s8.bf16 %v274_v35  ;;  %v307_v35 = vld [vmem:[#allocation5 + $0x7d0] sm:$0xff] }
  0xf0   :  { %987 = vmatprep.subr.bf16.mxu0 %v682_v50  ;;  %1159 = vmatprep.subr.bf16.mxu1 %v684_v51  ;;  %v756_v50 = vunpack.c.h.s8.bf16 %v276_v37  ;;  %v282_v51 = vld [vmem:[#allocation5 + $0x708] sm:$0xff] }
  0xf3   :  { %988 = vmatpush1.bf16.msra.mxu0 %v681_v31  ;;  %1160 = vmatpush1.bf16.msra.mxu1 %v683_v54  ;;  %v755_v31 = vunpack.c.h.s8.bf16 %v275_v43  ;;  %v762_v54 = vunpack.c.l.s8.bf16 %v282_v51 }
  0xf4   :  { %989 = vmatprep.subr.bf16.mxu0 %v690_v55  ;;  %1161 = vmatprep.subr.bf16.mxu1 %v692_v56  ;;  %v764_v55 = vunpack.c.l.s8.bf16 %v284_v52  ;;  %v281_v56 = vld [vmem:[#allocation5 + $0x700] sm:$0xff] }
  0xf5   :  { %v761_v58 = vunpack.c.l.s8.bf16 %v281_v56  ;;  %v769_v0 = vunpack.c.h.s8.bf16 %v281_v56  ;;  %v70_v56 = vld [vmem:[#allocation5 + $0x68] sm:$0xff] }
  0xf7   :  { %990 = vmatpush1.bf16.msra.mxu0 %v689_v59  ;;  %1162 = vmatpush1.bf16.msra.mxu1 %v691_v60  ;;  %v763_v59 = vunpack.c.l.s8.bf16 %v283_v57  ;;  %v770_v60 = vunpack.c.h.s8.bf16 %v282_v51  ;;  %v63_v51 = vld [vmem:[#allocation5 + $0x30] sm:$0xff] }
  0xf8   :  { %1002 = vmatprep.subr.bf16.mxu0 %v698_v61  ;;  %1174 = vmatprep.subr.bf16.mxu1 %v700_v62  ;;  %v772_v61 = vunpack.c.h.s8.bf16 %v284_v52  ;;  %v290_v62 = vld [vmem:[#allocation5 + $0x748] sm:$0xff]  ;;  %v2001_v52 = vcombine.low %v1987_v2, %v1989_v3  ;;  %v334_v2 = vunpack.c.l.s8.bf16 %v70_v56 }
  0xfa   :  { %992 = vmatmul.mubr.bf16.vlgmr.msra.gmra.mrb[0].mxu0 %v1985_v1  ;;  %1164 = vmatmul.mubr.bf16.vlgmr.msra.gmra.mrb[0].mxu1 %v1985_v1 }
  0xfb   :  { %1003 = vmatpush1.bf16.msra.mxu0 %v697_v4  ;;  %1175 = vmatpush1.bf16.msra.mxu1 %v699_v5  ;;  %v771_v4 = vunpack.c.h.s8.bf16 %v283_v57  ;;  %v778_v5 = vunpack.c.l.s8.bf16 %v290_v62  ;;  %v72_v57 = vld [vmem:[#allocation5 + $0x78] sm:$0xff] }
  0xfc   :  { %1004 = vmatprep.subr.bf16.mxu0 %v706_v6  ;;  %1176 = vmatprep.subr.bf16.mxu1 %v708_v7  ;;  %v780_v6 = vunpack.c.l.s8.bf16 %v292_v63  ;;  %v289_v7 = vld [vmem:[#allocation5 + $0x740] sm:$0xff]  ;;  %v336_v3 = vunpack.c.l.s8.bf16 %v72_v57 }
  0xfd   :  { %1034 = vmatprep.mubr.bf16.mxu0 %v1993_v10  ;;  %1206 = vmatprep.mubr.bf16.mxu1 %v1993_v10  ;;  %v777_v9 = vunpack.c.l.s8.bf16 %v289_v7  ;;  %v785_v14 = vunpack.c.h.s8.bf16 %v289_v7 }
  0xff   :  { %1005 = vmatpush1.bf16.msra.mxu0 %v705_v20  ;;  %1177 = vmatpush1.bf16.msra.mxu1 %v707_v21  ;;  %v779_v20 = vunpack.c.l.s8.bf16 %v291_v8  ;;  %v786_v21 = vunpack.c.h.s8.bf16 %v290_v62 }
 0x100   :  { %1006 = vmatprep.subr.bf16.mxu0 %v714_v11  ;;  %1178 = vmatprep.subr.bf16.mxu1 %v716_v12  ;;  %v788_v11 = vunpack.c.h.s8.bf16 %v292_v63  ;;  %v298_v12 = vld [vmem:[#allocation5 + $0x788] sm:$0xff] }
 0x103   :  { %1007 = vmatpush1.bf16.msra.mxu0 %v713_v15  ;;  %1179 = vmatpush1.bf16.msra.mxu1 %v715_v16  ;;  %v787_v15 = vunpack.c.h.s8.bf16 %v291_v8  ;;  %v794_v16 = vunpack.c.l.s8.bf16 %v298_v12 }
 0x104   :  { %1008 = vmatprep.subr.bf16.mxu0 %v722_v17  ;;  %1180 = vmatprep.subr.bf16.mxu1 %v724_v18  ;;  %v796_v17 = vunpack.c.l.s8.bf16 %v300_v13  ;;  %v297_v18 = vld [vmem:[#allocation5 + $0x780] sm:$0xff] }
 0x105   :  { %v793_v23 = vunpack.c.l.s8.bf16 %v297_v18  ;;  %v801_v46 = vunpack.c.h.s8.bf16 %v297_v18 }
 0x107   :  { %1009 = vmatpush1.bf16.msra.mxu0 %v721_v24  ;;  %1181 = vmatpush1.bf16.msra.mxu1 %v723_v25  ;;  %v795_v24 = vunpack.c.l.s8.bf16 %v299_v22  ;;  %v802_v25 = vunpack.c.h.s8.bf16 %v298_v12 }
 0x108   :  { %1010 = vmatprep.subr.bf16.mxu0 %v730_v26  ;;  %1182 = vmatprep.subr.bf16.mxu1 %v732_v27  ;;  %v804_v26 = vunpack.c.h.s8.bf16 %v300_v13  ;;  %v306_v27 = vld [vmem:[#allocation5 + $0x7c8] sm:$0xff] }
 0x10b   :  { %1011 = vmatpush1.bf16.msra.mxu0 %v729_v29  ;;  %1183 = vmatpush1.bf16.msra.mxu1 %v731_v32  ;;  %v803_v29 = vunpack.c.h.s8.bf16 %v299_v22  ;;  %v810_v32 = vunpack.c.l.s8.bf16 %v306_v27 }
 0x10c   :  { %1012 = vmatprep.subr.bf16.mxu0 %v738_v33  ;;  %1184 = vmatprep.subr.bf16.mxu1 %v740_v34  ;;  %v812_v33 = vunpack.c.l.s8.bf16 %v308_v45  ;;  %v305_v34 = vld [vmem:[#allocation5 + $0x7c0] sm:$0xff] }
 0x10d   :  { %v809_v37 = vunpack.c.l.s8.bf16 %v305_v34  ;;  %v817_v43 = vunpack.c.h.s8.bf16 %v305_v34 }
 0x10f   :  { %1013 = vmatpush1.bf16.msra.mxu0 %v737_v38  ;;  %1185 = vmatpush1.bf16.msra.mxu1 %v739_v39  ;;  %v811_v38 = vunpack.c.l.s8.bf16 %v307_v35  ;;  %v818_v39 = vunpack.c.h.s8.bf16 %v306_v27 }
 0x110   :  { %1014 = vmatprep.subr.bf16.mxu0 %v746_v40  ;;  %1186 = vmatprep.subr.bf16.mxu1 %v748_v41  ;;  %v820_v40 = vunpack.c.h.s8.bf16 %v308_v45  ;;  %v62_v41 = vld [vmem:[#allocation5 + $0x28] sm:$0xff] }
 0x113   :  { %1015 = vmatpush1.bf16.msra.mxu0 %v745_v47  ;;  %1187 = vmatpush1.bf16.msra.mxu1 %v747_v48  ;;  %v819_v47 = vunpack.c.h.s8.bf16 %v307_v35  ;;  %v318_v48 = vunpack.c.l.s8.bf16 %v62_v41 }
 0x114   :  { %1016 = vmatprep.subr.bf16.mxu0 %v754_v49  ;;  %1188 = vmatprep.subr.bf16.mxu1 %v756_v50  ;;  %v320_v49 = vunpack.c.l.s8.bf16 %v64_v42  ;;  %v61_v50 = vld [vmem:[#allocation5 + $0x20] sm:$0xff] }
 0x117   :  { %1017 = vmatpush1.bf16.msra.mxu0 %v753_v30  ;;  %1189 = vmatpush1.bf16.msra.mxu1 %v755_v31  ;;  %v317_v30 = vunpack.c.l.s8.bf16 %v61_v50  ;;  %v319_v31 = vunpack.c.l.s8.bf16 %v63_v51 }
 0x118   :  { %1018 = vmatprep.subr.bf16.mxu0 %v762_v54  ;;  %1190 = vmatprep.subr.bf16.mxu1 %v764_v55  ;;  %v326_v54 = vunpack.c.h.s8.bf16 %v62_v41  ;;  %v328_v55 = vunpack.c.h.s8.bf16 %v64_v42 }
 0x11b   :  { %1019 = vmatpush1.bf16.msra.mxu0 %v761_v58  ;;  %1191 = vmatpush1.bf16.msra.mxu1 %v763_v59  ;;  %v325_v58 = vunpack.c.h.s8.bf16 %v61_v50  ;;  %v327_v59 = vunpack.c.h.s8.bf16 %v63_v51 }
 0x11c   :  { %1020 = vmatprep.subr.bf16.mxu0 %v770_v60  ;;  %1192 = vmatprep.subr.bf16.mxu1 %v772_v61  ;;  %v69_v60 = vld [vmem:[#allocation5 + $0x60] sm:$0xff]  ;;  %v71_v61 = vld [vmem:[#allocation5 + $0x70] sm:$0xff] }
 0x11d   :  { %v333_v62 = vunpack.c.l.s8.bf16 %v69_v60  ;;  %v335_v63 = vunpack.c.l.s8.bf16 %v71_v61  ;;  %v341_v7 = vunpack.c.h.s8.bf16 %v69_v60  ;;  %v343_v8 = vunpack.c.h.s8.bf16 %v71_v61 }
 0x11f   :  { %1021 = vmatpush1.bf16.msra.mxu0 %v769_v0  ;;  %1193 = vmatpush1.bf16.msra.mxu1 %v771_v4  ;;  %v342_v0 = vunpack.c.h.s8.bf16 %v70_v56  ;;  %v344_v4 = vunpack.c.h.s8.bf16 %v72_v57 }
 0x120   :  { %1022 = vmatprep.subr.bf16.mxu0 %v778_v5  ;;  %1194 = vmatprep.subr.bf16.mxu1 %v780_v6  ;;  %v78_v5 = vld [vmem:[#allocation5 + $0xa8] sm:$0xff]  ;;  %v80_v6 = vld [vmem:[#allocation5 + $0xb8] sm:$0xff] }
 0x121   :  { %v358_v13 = vunpack.c.h.s8.bf16 %v78_v5 }
 0x123   :  { %1023 = vmatpush1.bf16.msra.mxu0 %v777_v9  ;;  %1195 = vmatpush1.bf16.msra.mxu1 %v779_v20  ;;  %v350_v9 = vunpack.c.l.s8.bf16 %v78_v5  ;;  %v352_v20 = vunpack.c.l.s8.bf16 %v80_v6 }
 0x124   :  { %1024 = vmatprep.subr.bf16.mxu0 %v786_v21  ;;  %1196 = vmatprep.subr.bf16.mxu1 %v788_v11  ;;  %v77_v21 = vld [vmem:[#allocation5 + $0xa0] sm:$0xff] }
 0x125   :  { %v349_v11 = vunpack.c.l.s8.bf16 %v77_v21 }
 0x127   :  { %1025 = vmatpush1.bf16.msra.mxu0 %v785_v14  ;;  %1197 = vmatpush1.bf16.msra.mxu1 %v787_v15  ;;  %v360_v14 = vunpack.c.h.s8.bf16 %v80_v6  ;;  %v86_v15 = vld [vmem:[#allocation5 + $0xe8] sm:$0xff] }
 0x128   :  { %1026 = vmatprep.subr.bf16.mxu0 %v794_v16  ;;  %1198 = vmatprep.subr.bf16.mxu1 %v796_v17  ;;  %v88_v16 = vld [vmem:[#allocation5 + $0xf8] sm:$0xff]  ;;  %v357_v17 = vunpack.c.h.s8.bf16 %v77_v21  ;;  %v366_v22 = vunpack.c.l.s8.bf16 %v86_v15  ;;  %v374_v45 = vunpack.c.h.s8.bf16 %v86_v15 }
 0x12b   :  { %1027 = vmatpush1.bf16.msra.mxu0 %v793_v23  ;;  %1199 = vmatpush1.bf16.msra.mxu1 %v795_v24  ;;  %v368_v23 = vunpack.c.l.s8.bf16 %v88_v16  ;;  %v85_v24 = vld [vmem:[#allocation5 + $0xe0] sm:$0xff] }
 0x12c   :  { %1028 = vmatprep.subr.bf16.mxu0 %v802_v25  ;;  %1200 = vmatprep.subr.bf16.mxu1 %v804_v26  ;;  %v87_v25 = vld [vmem:[#allocation5 + $0xf0] sm:$0xff]  ;;  %v365_v26 = vunpack.c.l.s8.bf16 %v85_v24 }
 0x12d   :  { %v367_v27 = vunpack.c.l.s8.bf16 %v87_v25  ;;  %v375_v34 = vunpack.c.h.s8.bf16 %v87_v25 }
 0x12f   :  { %1029 = vmatpush1.bf16.msra.mxu0 %v801_v46  ;;  %1201 = vmatpush1.bf16.msra.mxu1 %v803_v29  ;;  %v376_v46 = vunpack.c.h.s8.bf16 %v88_v16  ;;  %v94_v29 = vld [vmem:[#allocation5 + $0x128] sm:$0xff] }
 0x130   :  { %1030 = vmatprep.subr.bf16.mxu0 %v810_v32  ;;  %1202 = vmatprep.subr.bf16.mxu1 %v812_v33  ;;  %v96_v32 = vld [vmem:[#allocation5 + $0x138] sm:$0xff]  ;;  %v373_v33 = vunpack.c.h.s8.bf16 %v85_v24  ;;  %v382_v35 = vunpack.c.l.s8.bf16 %v94_v29  ;;  %v390_v42 = vunpack.c.h.s8.bf16 %v94_v29 }
 0x133   :  { %1031 = vmatpush1.bf16.msra.mxu0 %v809_v37  ;;  %1203 = vmatpush1.bf16.msra.mxu1 %v811_v38  ;;  %v384_v37 = vunpack.c.l.s8.bf16 %v96_v32  ;;  %v93_v38 = vld [vmem:[#allocation5 + $0x120] sm:$0xff] }
 0x134   :  { %1032 = vmatprep.subr.bf16.mxu0 %v818_v39  ;;  %1204 = vmatprep.subr.bf16.mxu1 %v820_v40  ;;  %v95_v39 = vld [vmem:[#allocation5 + $0x130] sm:$0xff]  ;;  %v381_v40 = vunpack.c.l.s8.bf16 %v93_v38 }
 0x135   :  { %v383_v41 = vunpack.c.l.s8.bf16 %v95_v39  ;;  %v391_v50 = vunpack.c.h.s8.bf16 %v95_v39 }
 0x137   :  { %1033 = vmatpush1.bf16.msra.mxu0 %v817_v43  ;;  %1205 = vmatpush1.bf16.msra.mxu1 %v819_v47  ;;  %v392_v43 = vunpack.c.h.s8.bf16 %v96_v32  ;;  %v102_v47 = vld [vmem:[#allocation5 + $0x168] sm:$0xff] }
 0x138   :  { %1217 = vmatprep.subr.bf16.mxu0 %v318_v48  ;;  %1389 = vmatprep.subr.bf16.mxu1 %v320_v49  ;;  %v104_v48 = vld [vmem:[#allocation5 + $0x178] sm:$0xff]  ;;  %v389_v49 = vunpack.c.h.s8.bf16 %v93_v38  ;;  %v398_v51 = vunpack.c.l.s8.bf16 %v102_v47  ;;  %v406_v57 = vunpack.c.h.s8.bf16 %v102_v47 }
 0x13a   :  { %1035 = vmatmul.mubr.bf16.vlgmr.msra.gmra.mrb[0].mxu0 %v2001_v52  ;;  %1207 = vmatmul.mubr.bf16.vlgmr.msra.gmra.mrb[0].mxu1 %v2001_v52 }
 0x13b   :  { %1218 = vmatpush1.bf16.msra.mxu0 %v317_v30  ;;  %1390 = vmatpush1.bf16.msra.mxu1 %v319_v31  ;;  %v400_v30 = vunpack.c.l.s8.bf16 %v104_v48  ;;  %v101_v31 = vld [vmem:[#allocation5 + $0x160] sm:$0xff] }
 0x13c   :  { %1219 = vmatprep.subr.bf16.mxu0 %v326_v54  ;;  %1391 = vmatprep.subr.bf16.mxu1 %v328_v55  ;;  %v103_v54 = vld [vmem:[#allocation5 + $0x170] sm:$0xff]  ;;  %v397_v55 = vunpack.c.l.s8.bf16 %v101_v31 }
 0x13d   :  { %1249 = vmatprep.mubr.bf16.mxu0 %v1947_v36  ;;  %1421 = vmatprep.mubr.bf16.mxu1 %v1947_v36  ;;  %v79_v36 = vld [vmem:[#allocation5 + $0xb0] sm:$0xff]  ;;  %v399_v56 = vunpack.c.l.s8.bf16 %v103_v54  ;;  %v407_v60 = vunpack.c.h.s8.bf16 %v103_v54 }
 0x13e   :  { %v351_v12 = vunpack.c.l.s8.bf16 %v79_v36  ;;  %v359_v18 = vunpack.c.h.s8.bf16 %v79_v36 }
 0x13f   :  { %1220 = vmatpush1.bf16.msra.mxu0 %v325_v58  ;;  %1392 = vmatpush1.bf16.msra.mxu1 %v327_v59  ;;  %v408_v58 = vunpack.c.h.s8.bf16 %v104_v48  ;;  %v110_v59 = vld [vmem:[#allocation5 + $0x1a8] sm:$0xff] }
 0x140   :  { %1221 = vmatprep.subr.bf16.mxu0 %v334_v2  ;;  %1393 = vmatprep.subr.bf16.mxu1 %v336_v3  ;;  %v112_v2 = vld [vmem:[#allocation5 + $0x1b8] sm:$0xff]  ;;  %v405_v3 = vunpack.c.h.s8.bf16 %v101_v31  ;;  %v414_v61 = vunpack.c.l.s8.bf16 %v110_v59  ;;  %v422_v6 = vunpack.c.h.s8.bf16 %v110_v59 }
 0x143   :  { %1222 = vmatpush1.bf16.msra.mxu0 %v333_v62  ;;  %1394 = vmatpush1.bf16.msra.mxu1 %v335_v63  ;;  %v416_v62 = vunpack.c.l.s8.bf16 %v112_v2  ;;  %v109_v63 = vld [vmem:[#allocation5 + $0x1a0] sm:$0xff] }
 0x144   :  { %1223 = vmatprep.subr.bf16.mxu0 %v342_v0  ;;  %1395 = vmatprep.subr.bf16.mxu1 %v344_v4  ;;  %v111_v0 = vld [vmem:[#allocation5 + $0x1b0] sm:$0xff]  ;;  %v413_v4 = vunpack.c.l.s8.bf16 %v109_v63 }
 0x145   :  { %v415_v5 = vunpack.c.l.s8.bf16 %v111_v0  ;;  %v423_v21 = vunpack.c.h.s8.bf16 %v111_v0  ;;  %v149_v0 = vld [vmem:[#allocation5 + $0x2e0] sm:$0xff] }
 0x147   :  { %1224 = vmatpush1.bf16.msra.mxu0 %v341_v7  ;;  %1396 = vmatpush1.bf16.msra.mxu1 %v343_v8  ;;  %v424_v7 = vunpack.c.h.s8.bf16 %v112_v2  ;;  %v118_v8 = vld [vmem:[#allocation5 + $0x1e8] sm:$0xff] }
 0x148   :  { %1225 = vmatprep.subr.bf16.mxu0 %v350_v9  ;;  %1397 = vmatprep.subr.bf16.mxu1 %v352_v20  ;;  %v120_v9 = vld [vmem:[#allocation5 + $0x1f8] sm:$0xff]  ;;  %v421_v20 = vunpack.c.h.s8.bf16 %v109_v63  ;;  %v430_v36 = vunpack.c.l.s8.bf16 %v118_v8  ;;  %v438_v16 = vunpack.c.h.s8.bf16 %v118_v8  ;;  %v150_v2 = vld [vmem:[#allocation5 + $0x2e8] sm:$0xff] }
 0x14b   :  { %1226 = vmatpush1.bf16.msra.mxu0 %v349_v11  ;;  %1398 = vmatpush1.bf16.msra.mxu1 %v351_v12  ;;  %v432_v11 = vunpack.c.l.s8.bf16 %v120_v9  ;;  %v117_v12 = vld [vmem:[#allocation5 + $0x1e0] sm:$0xff] }
 0x14c   :  { %1227 = vmatprep.subr.bf16.mxu0 %v358_v13  ;;  %1399 = vmatprep.subr.bf16.mxu1 %v360_v14  ;;  %v119_v13 = vld [vmem:[#allocation5 + $0x1f0] sm:$0xff]  ;;  %v429_v14 = vunpack.c.l.s8.bf16 %v117_v12 }
 0x14d   :  { %v431_v15 = vunpack.c.l.s8.bf16 %v119_v13  ;;  %v439_v24 = vunpack.c.h.s8.bf16 %v119_v13  ;;  %v157_v13 = vld [vmem:[#allocation5 + $0x320] sm:$0xff] }
 0x14f   :  { %1228 = vmatpush1.bf16.msra.mxu0 %v357_v17  ;;  %1400 = vmatpush1.bf16.msra.mxu1 %v359_v18  ;;  %v440_v17 = vunpack.c.h.s8.bf16 %v120_v9  ;;  %v126_v18 = vld [vmem:[#allocation5 + $0x228] sm:$0xff] }
 0x150   :  { %1229 = vmatprep.subr.bf16.mxu0 %v366_v22  ;;  %1401 = vmatprep.subr.bf16.mxu1 %v368_v23  ;;  %v128_v22 = vld [vmem:[#allocation5 + $0x238] sm:$0xff]  ;;  %v437_v23 = vunpack.c.h.s8.bf16 %v117_v12  ;;  %v446_v25 = vunpack.c.l.s8.bf16 %v126_v18  ;;  %v454_v32 = vunpack.c.h.s8.bf16 %v126_v18  ;;  %v158_v9 = vld [vmem:[#allocation5 + $0x328] sm:$0xff] }
 0x153   :  { %1230 = vmatpush1.bf16.msra.mxu0 %v365_v26  ;;  %1402 = vmatpush1.bf16.msra.mxu1 %v367_v27  ;;  %v448_v26 = vunpack.c.l.s8.bf16 %v128_v22  ;;  %v125_v27 = vld [vmem:[#allocation5 + $0x220] sm:$0xff] }
 0x154   :  { %1231 = vmatprep.subr.bf16.mxu0 %v374_v45  ;;  %1403 = vmatprep.subr.bf16.mxu1 %v376_v46  ;;  %v127_v45 = vld [vmem:[#allocation5 + $0x230] sm:$0xff]  ;;  %v445_v46 = vunpack.c.l.s8.bf16 %v125_v27 }
 0x155   :  { %v447_v29 = vunpack.c.l.s8.bf16 %v127_v45  ;;  %v455_v38 = vunpack.c.h.s8.bf16 %v127_v45  ;;  %v165_v45 = vld [vmem:[#allocation5 + $0x360] sm:$0xff] }
 0x157   :  { %1232 = vmatpush1.bf16.msra.mxu0 %v373_v33  ;;  %1404 = vmatpush1.bf16.msra.mxu1 %v375_v34  ;;  %v456_v33 = vunpack.c.h.s8.bf16 %v128_v22  ;;  %v134_v34 = vld [vmem:[#allocation5 + $0x268] sm:$0xff] }
 0x158   :  { %1233 = vmatprep.subr.bf16.mxu0 %v382_v35  ;;  %1405 = vmatprep.subr.bf16.mxu1 %v384_v37  ;;  %v136_v35 = vld [vmem:[#allocation5 + $0x278] sm:$0xff]  ;;  %v453_v37 = vunpack.c.h.s8.bf16 %v125_v27  ;;  %v462_v39 = vunpack.c.l.s8.bf16 %v134_v34  ;;  %v166_v22 = vld [vmem:[#allocation5 + $0x368] sm:$0xff] }
 0x159   :  { %v472_v48 = vunpack.c.h.s8.bf16 %v136_v35 }
 0x15b   :  { %1234 = vmatpush1.bf16.msra.mxu0 %v381_v40  ;;  %1406 = vmatpush1.bf16.msra.mxu1 %v383_v41  ;;  %v464_v40 = vunpack.c.l.s8.bf16 %v136_v35  ;;  %v133_v41 = vld [vmem:[#allocation5 + $0x260] sm:$0xff]  ;;  %v174_v35 = vld [vmem:[#allocation5 + $0x3a8] sm:$0xff] }
 0x15c   :  { %1235 = vmatprep.subr.bf16.mxu0 %v390_v42  ;;  %1407 = vmatprep.subr.bf16.mxu1 %v392_v43  ;;  %v135_v42 = vld [vmem:[#allocation5 + $0x270] sm:$0xff]  ;;  %v461_v43 = vunpack.c.l.s8.bf16 %v133_v41 }
 0x15d   :  { %v463_v47 = vunpack.c.l.s8.bf16 %v135_v42 }
 0x15f   :  { %1236 = vmatpush1.bf16.msra.mxu0 %v389_v49  ;;  %1408 = vmatpush1.bf16.msra.mxu1 %v391_v50  ;;  %v142_v49 = vld [vmem:[#allocation5 + $0x2a8] sm:$0xff]  ;;  %v144_v50 = vld [vmem:[#allocation5 + $0x2b8] sm:$0xff] }
 0x160   :  { %1237 = vmatprep.subr.bf16.mxu0 %v398_v51  ;;  %1409 = vmatprep.subr.bf16.mxu1 %v400_v30  ;;  %v469_v51 = vunpack.c.h.s8.bf16 %v133_v41  ;;  %v471_v30 = vunpack.c.h.s8.bf16 %v135_v42  ;;  %v478_v31 = vunpack.c.l.s8.bf16 %v142_v49  ;;  %v480_v54 = vunpack.c.l.s8.bf16 %v144_v50  ;;  %v173_v42 = vld [vmem:[#allocation5 + $0x3a0] sm:$0xff] }
 0x161   :  { %v488_v59 = vunpack.c.h.s8.bf16 %v144_v50  ;;  %v182_v50 = vld [vmem:[#allocation5 + $0x3e8] sm:$0xff] }
 0x163   :  { %1238 = vmatpush1.bf16.msra.mxu0 %v397_v55  ;;  %1410 = vmatpush1.bf16.msra.mxu1 %v399_v56  ;;  %v141_v55 = vld [vmem:[#allocation5 + $0x2a0] sm:$0xff] }
 0x164   :  { %1239 = vmatprep.subr.bf16.mxu0 %v406_v57  ;;  %1411 = vmatprep.subr.bf16.mxu1 %v408_v58  ;;  %v477_v56 = vunpack.c.l.s8.bf16 %v141_v55  ;;  %v486_v58 = vunpack.c.h.s8.bf16 %v142_v49 }
 0x167   :  { %1240 = vmatpush1.bf16.msra.mxu0 %v405_v3  ;;  %1412 = vmatpush1.bf16.msra.mxu1 %v407_v60  ;;  %v152_v3 = vld [vmem:[#allocation5 + $0x2f8] sm:$0xff]  ;;  %v485_v60 = vunpack.c.h.s8.bf16 %v141_v55 }
 0x168   :  { %1241 = vmatprep.subr.bf16.mxu0 %v414_v61  ;;  %1413 = vmatprep.subr.bf16.mxu1 %v416_v62  ;;  %v494_v62 = vunpack.c.l.s8.bf16 %v150_v2  ;;  %v496_v63 = vunpack.c.l.s8.bf16 %v152_v3  ;;  %v504_v8 = vunpack.c.h.s8.bf16 %v152_v3  ;;  %v190_v3 = vld [vmem:[#allocation5 + $0x428] sm:$0xff] }
 0x16b   :  { %1242 = vmatpush1.bf16.msra.mxu0 %v413_v4  ;;  %1414 = vmatpush1.bf16.msra.mxu1 %v415_v5  ;;  %v151_v4 = vld [vmem:[#allocation5 + $0x2f0] sm:$0xff]  ;;  %v493_v5 = vunpack.c.l.s8.bf16 %v149_v0 }
 0x16c   :  { %1243 = vmatprep.subr.bf16.mxu0 %v422_v6  ;;  %1415 = vmatprep.subr.bf16.mxu1 %v424_v7  ;;  %v495_v6 = vunpack.c.l.s8.bf16 %v151_v4  ;;  %v502_v7 = vunpack.c.h.s8.bf16 %v150_v2 }
 0x16f   :  { %1244 = vmatpush1.bf16.msra.mxu0 %v421_v20  ;;  %1416 = vmatpush1.bf16.msra.mxu1 %v423_v21  ;;  %v160_v20 = vld [vmem:[#allocation5 + $0x338] sm:$0xff]  ;;  %v501_v21 = vunpack.c.h.s8.bf16 %v149_v0 }
 0x170   :  { %1245 = vmatprep.subr.bf16.mxu0 %v430_v36  ;;  %1417 = vmatprep.subr.bf16.mxu1 %v432_v11  ;;  %v503_v36 = vunpack.c.h.s8.bf16 %v151_v4  ;;  %v510_v11 = vunpack.c.l.s8.bf16 %v158_v9  ;;  %v512_v12 = vunpack.c.l.s8.bf16 %v160_v20  ;;  %v520_v18 = vunpack.c.h.s8.bf16 %v160_v20  ;;  %v189_v4 = vld [vmem:[#allocation5 + $0x420] sm:$0xff]  ;;  %v198_v20 = vld [vmem:[#allocation5 + $0x468] sm:$0xff] }
 0x173   :  { %1246 = vmatpush1.bf16.msra.mxu0 %v429_v14  ;;  %1418 = vmatpush1.bf16.msra.mxu1 %v431_v15  ;;  %v159_v14 = vld [vmem:[#allocation5 + $0x330] sm:$0xff]  ;;  %v509_v15 = vunpack.c.l.s8.bf16 %v157_v13 }
 0x174   :  { %1247 = vmatprep.subr.bf16.mxu0 %v438_v16  ;;  %1419 = vmatprep.subr.bf16.mxu1 %v440_v17  ;;  %v511_v16 = vunpack.c.l.s8.bf16 %v159_v14  ;;  %v518_v17 = vunpack.c.h.s8.bf16 %v158_v9 }
 0x177   :  { %1248 = vmatpush1.bf16.msra.mxu0 %v437_v23  ;;  %1420 = vmatpush1.bf16.msra.mxu1 %v439_v24  ;;  %v168_v23 = vld [vmem:[#allocation5 + $0x378] sm:$0xff]  ;;  %v517_v24 = vunpack.c.h.s8.bf16 %v157_v13 }
 0x178   :  { %1260 = vmatprep.subr.bf16.mxu0 %v446_v25  ;;  %1432 = vmatprep.subr.bf16.mxu1 %v448_v26  ;;  %v519_v25 = vunpack.c.h.s8.bf16 %v159_v14  ;;  %v526_v26 = vunpack.c.l.s8.bf16 %v166_v22  ;;  %v528_v27 = vunpack.c.l.s8.bf16 %v168_v23  ;;  %v197_v14 = vld [vmem:[#allocation5 + $0x460] sm:$0xff] }
 0x17a   :  { %1250 = vmatmul.mubr.bf16.vlgmr.msra.gmra.mrb[4].mxu0 %v1953_v44  ;;  %1422 = vmatmul.mubr.bf16.vlgmr.msra.gmra.mrb[4].mxu1 %v1953_v44  ;;  %v470_v44 = vunpack.c.h.s8.bf16 %v134_v34  ;;  %v536_v34 = vunpack.c.h.s8.bf16 %v168_v23  ;;  %v208_v23 = vld [vmem:[#allocation5 + $0x4b8] sm:$0xff] }
 0x17b   :  { %1261 = vmatpush1.bf16.msra.mxu0 %v445_v46  ;;  %1433 = vmatpush1.bf16.msra.mxu1 %v447_v29  ;;  %v167_v46 = vld [vmem:[#allocation5 + $0x370] sm:$0xff]  ;;  %v525_v29 = vunpack.c.l.s8.bf16 %v165_v45 }
 0x17c   :  { %1262 = vmatprep.subr.bf16.mxu0 %v454_v32  ;;  %1434 = vmatprep.subr.bf16.mxu1 %v456_v33  ;;  %v527_v32 = vunpack.c.l.s8.bf16 %v167_v46  ;;  %v534_v33 = vunpack.c.h.s8.bf16 %v166_v22  ;;  %v206_v22 = vld [vmem:[#allocation5 + $0x4a8] sm:$0xff] }
 0x17d   :  { %1292 = vmatprep.mubr.bf16.mxu0 %v1961_v53  ;;  %1464 = vmatprep.mubr.bf16.mxu1 %v1961_v53  ;;  %v143_v53 = vld [vmem:[#allocation5 + $0x2b0] sm:$0xff] }
 0x17e   :  { %v479_v57 = vunpack.c.l.s8.bf16 %v143_v53  ;;  %v487_v61 = vunpack.c.h.s8.bf16 %v143_v53  ;;  %v181_v53 = vld [vmem:[#allocation5 + $0x3e0] sm:$0xff] }
 0x17f   :  { %1263 = vmatpush1.bf16.msra.mxu0 %v453_v37  ;;  %1435 = vmatpush1.bf16.msra.mxu1 %v455_v38  ;;  %v176_v37 = vld [vmem:[#allocation5 + $0x3b8] sm:$0xff]  ;;  %v533_v38 = vunpack.c.h.s8.bf16 %v165_v45  ;;  %v205_v45 = vld [vmem:[#allocation5 + $0x4a0] sm:$0xff] }
 0x180   :  { %1264 = vmatprep.subr.bf16.mxu0 %v462_v39  ;;  %1436 = vmatprep.subr.bf16.mxu1 %v464_v40  ;;  %v535_v39 = vunpack.c.h.s8.bf16 %v167_v46  ;;  %v542_v40 = vunpack.c.l.s8.bf16 %v174_v35  ;;  %v544_v41 = vunpack.c.l.s8.bf16 %v176_v37  ;;  %v552_v49 = vunpack.c.h.s8.bf16 %v176_v37 }
 0x181   :  { %v605_v46 = vunpack.c.l.s8.bf16 %v205_v45  ;;  %v613_v37 = vunpack.c.h.s8.bf16 %v205_v45  ;;  %v247_v45 = vld [vmem:[#allocation5 + $0x5f0] sm:$0xff] }
 0x183   :  { %1265 = vmatpush1.bf16.msra.mxu0 %v461_v43  ;;  %1437 = vmatpush1.bf16.msra.mxu1 %v463_v47  ;;  %v175_v43 = vld [vmem:[#allocation5 + $0x3b0] sm:$0xff]  ;;  %v541_v47 = vunpack.c.l.s8.bf16 %v173_v42 }
 0x184   :  { %1266 = vmatprep.subr.bf16.mxu0 %v470_v44  ;;  %1438 = vmatprep.subr.bf16.mxu1 %v472_v48  ;;  %v543_v44 = vunpack.c.l.s8.bf16 %v175_v43  ;;  %v550_v48 = vunpack.c.h.s8.bf16 %v174_v35  ;;  %v216_v35 = vld [vmem:[#allocation5 + $0x4f8] sm:$0xff] }
 0x187   :  { %1267 = vmatpush1.bf16.msra.mxu0 %v469_v51  ;;  %1439 = vmatpush1.bf16.msra.mxu1 %v471_v30  ;;  %v184_v51 = vld [vmem:[#allocation5 + $0x3f8] sm:$0xff]  ;;  %v549_v30 = vunpack.c.h.s8.bf16 %v173_v42  ;;  %v215_v42 = vld [vmem:[#allocation5 + $0x4f0] sm:$0xff] }
 0x188   :  { %1268 = vmatprep.subr.bf16.mxu0 %v478_v31  ;;  %1440 = vmatprep.subr.bf16.mxu1 %v480_v54  ;;  %v551_v31 = vunpack.c.h.s8.bf16 %v175_v43  ;;  %v558_v54 = vunpack.c.l.s8.bf16 %v182_v50  ;;  %v560_v55 = vunpack.c.l.s8.bf16 %v184_v51  ;;  %v568_v2 = vunpack.c.h.s8.bf16 %v184_v51 }
 0x18b   :  { %1269 = vmatpush1.bf16.msra.mxu0 %v477_v56  ;;  %1441 = vmatpush1.bf16.msra.mxu1 %v479_v57  ;;  %v183_v56 = vld [vmem:[#allocation5 + $0x3f0] sm:$0xff]  ;;  %v557_v57 = vunpack.c.l.s8.bf16 %v181_v53 }
 0x18c   :  { %1270 = vmatprep.subr.bf16.mxu0 %v486_v58  ;;  %1442 = vmatprep.subr.bf16.mxu1 %v488_v59  ;;  %v559_v58 = vunpack.c.l.s8.bf16 %v183_v56  ;;  %v566_v59 = vunpack.c.h.s8.bf16 %v182_v50  ;;  %v224_v50 = vld [vmem:[#allocation5 + $0x538] sm:$0xff] }
 0x18f   :  { %1271 = vmatpush1.bf16.msra.mxu0 %v485_v60  ;;  %1443 = vmatpush1.bf16.msra.mxu1 %v487_v61  ;;  %v192_v60 = vld [vmem:[#allocation5 + $0x438] sm:$0xff]  ;;  %v565_v61 = vunpack.c.h.s8.bf16 %v181_v53  ;;  %v223_v53 = vld [vmem:[#allocation5 + $0x530] sm:$0xff] }
 0x190   :  { %1272 = vmatprep.subr.bf16.mxu0 %v494_v62  ;;  %1444 = vmatprep.subr.bf16.mxu1 %v496_v63  ;;  %v567_v62 = vunpack.c.h.s8.bf16 %v183_v56  ;;  %v574_v63 = vunpack.c.l.s8.bf16 %v190_v3  ;;  %v576_v0 = vunpack.c.l.s8.bf16 %v192_v60  ;;  %v584_v9 = vunpack.c.h.s8.bf16 %v192_v60 }
 0x193   :  { %1273 = vmatpush1.bf16.msra.mxu0 %v493_v5  ;;  %1445 = vmatpush1.bf16.msra.mxu1 %v495_v6  ;;  %v191_v5 = vld [vmem:[#allocation5 + $0x430] sm:$0xff]  ;;  %v573_v6 = vunpack.c.l.s8.bf16 %v189_v4 }
 0x194   :  { %1274 = vmatprep.subr.bf16.mxu0 %v502_v7  ;;  %1446 = vmatprep.subr.bf16.mxu1 %v504_v8  ;;  %v575_v7 = vunpack.c.l.s8.bf16 %v191_v5  ;;  %v582_v8 = vunpack.c.h.s8.bf16 %v190_v3  ;;  %v232_v3 = vld [vmem:[#allocation5 + $0x578] sm:$0xff] }
 0x197   :  { %1275 = vmatpush1.bf16.msra.mxu0 %v501_v21  ;;  %1447 = vmatpush1.bf16.msra.mxu1 %v503_v36  ;;  %v200_v21 = vld [vmem:[#allocation5 + $0x478] sm:$0xff]  ;;  %v581_v36 = vunpack.c.h.s8.bf16 %v189_v4  ;;  %v231_v4 = vld [vmem:[#allocation5 + $0x570] sm:$0xff] }
 0x198   :  { %1276 = vmatprep.subr.bf16.mxu0 %v510_v11  ;;  %1448 = vmatprep.subr.bf16.mxu1 %v512_v12  ;;  %v583_v11 = vunpack.c.h.s8.bf16 %v191_v5  ;;  %v590_v12 = vunpack.c.l.s8.bf16 %v198_v20  ;;  %v592_v13 = vunpack.c.l.s8.bf16 %v200_v21 }
 0x19b   :  { %1277 = vmatpush1.bf16.msra.mxu0 %v509_v15  ;;  %1449 = vmatpush1.bf16.msra.mxu1 %v511_v16  ;;  %v199_v15 = vld [vmem:[#allocation5 + $0x470] sm:$0xff]  ;;  %v589_v16 = vunpack.c.l.s8.bf16 %v197_v14 }
 0x19c   :  { %1278 = vmatprep.subr.bf16.mxu0 %v518_v17  ;;  %1450 = vmatprep.subr.bf16.mxu1 %v520_v18  ;;  %v591_v17 = vunpack.c.l.s8.bf16 %v199_v15  ;;  %v600_v18 = vunpack.c.h.s8.bf16 %v200_v21 }
 0x19f   :  { %1279 = vmatpush1.bf16.msra.mxu0 %v517_v24  ;;  %1451 = vmatpush1.bf16.msra.mxu1 %v519_v25  ;;  %v597_v24 = vunpack.c.h.s8.bf16 %v197_v14  ;;  %v599_v25 = vunpack.c.h.s8.bf16 %v199_v15  ;;  %v239_v14 = vld [vmem:[#allocation5 + $0x5b0] sm:$0xff] }
 0x1a0   :  { %1280 = vmatprep.subr.bf16.mxu0 %v526_v26  ;;  %1452 = vmatprep.subr.bf16.mxu1 %v528_v27  ;;  %v606_v26 = vunpack.c.l.s8.bf16 %v206_v22  ;;  %v608_v27 = vunpack.c.l.s8.bf16 %v208_v23 }
 0x1a3   :  { %1281 = vmatpush1.bf16.msra.mxu0 %v525_v29  ;;  %1453 = vmatpush1.bf16.msra.mxu1 %v527_v32  ;;  %v614_v32 = vunpack.c.h.s8.bf16 %v206_v22  ;;  %v248_v22 = vld [vmem:[#allocation5 + $0x5f8] sm:$0xff] }
 0x1a4   :  { %1282 = vmatprep.subr.bf16.mxu0 %v534_v33  ;;  %1454 = vmatprep.subr.bf16.mxu1 %v536_v34  ;;  %v616_v33 = vunpack.c.h.s8.bf16 %v208_v23  ;;  %v214_v34 = vld [vmem:[#allocation5 + $0x4e8] sm:$0xff] }
 0x1a7   :  { %1283 = vmatpush1.bf16.msra.mxu0 %v533_v38  ;;  %1455 = vmatpush1.bf16.msra.mxu1 %v535_v39  ;;  %v622_v39 = vunpack.c.l.s8.bf16 %v214_v34 }
 0x1a8   :  { %1284 = vmatprep.subr.bf16.mxu0 %v542_v40  ;;  %1456 = vmatprep.subr.bf16.mxu1 %v544_v41  ;;  %v624_v40 = vunpack.c.l.s8.bf16 %v216_v35  ;;  %v213_v41 = vld [vmem:[#allocation5 + $0x4e0] sm:$0xff] }
 0x1a9   :  { %v621_v43 = vunpack.c.l.s8.bf16 %v213_v41  ;;  %v629_v51 = vunpack.c.h.s8.bf16 %v213_v41  ;;  %v255_v41 = vld [vmem:[#allocation5 + $0x630] sm:$0xff] }
 0x1ab   :  { %1285 = vmatpush1.bf16.msra.mxu0 %v541_v47  ;;  %1457 = vmatpush1.bf16.msra.mxu1 %v543_v44  ;;  %v623_v47 = vunpack.c.l.s8.bf16 %v215_v42  ;;  %v630_v44 = vunpack.c.h.s8.bf16 %v214_v34  ;;  %v256_v34 = vld [vmem:[#allocation5 + $0x638] sm:$0xff] }
 0x1ac   :  { %1286 = vmatprep.subr.bf16.mxu0 %v550_v48  ;;  %1458 = vmatprep.subr.bf16.mxu1 %v552_v49  ;;  %v632_v48 = vunpack.c.h.s8.bf16 %v216_v35  ;;  %v222_v49 = vld [vmem:[#allocation5 + $0x528] sm:$0xff] }
 0x1af   :  { %1287 = vmatpush1.bf16.msra.mxu0 %v549_v30  ;;  %1459 = vmatpush1.bf16.msra.mxu1 %v551_v31  ;;  %v631_v30 = vunpack.c.h.s8.bf16 %v215_v42  ;;  %v638_v31 = vunpack.c.l.s8.bf16 %v222_v49 }
 0x1b0   :  { %1288 = vmatprep.subr.bf16.mxu0 %v558_v54  ;;  %1460 = vmatprep.subr.bf16.mxu1 %v560_v55  ;;  %v640_v54 = vunpack.c.l.s8.bf16 %v224_v50  ;;  %v221_v55 = vld [vmem:[#allocation5 + $0x520] sm:$0xff] }
 0x1b1   :  { %v637_v56 = vunpack.c.l.s8.bf16 %v221_v55  ;;  %v645_v60 = vunpack.c.h.s8.bf16 %v221_v55  ;;  %v263_v55 = vld [vmem:[#allocation5 + $0x670] sm:$0xff] }
 0x1b3   :  { %1289 = vmatpush1.bf16.msra.mxu0 %v557_v57  ;;  %1461 = vmatpush1.bf16.msra.mxu1 %v559_v58  ;;  %v639_v57 = vunpack.c.l.s8.bf16 %v223_v53  ;;  %v646_v58 = vunpack.c.h.s8.bf16 %v222_v49  ;;  %v264_v49 = vld [vmem:[#allocation5 + $0x678] sm:$0xff] }
 0x1b4   :  { %1290 = vmatprep.subr.bf16.mxu0 %v566_v59  ;;  %1462 = vmatprep.subr.bf16.mxu1 %v568_v2  ;;  %v648_v59 = vunpack.c.h.s8.bf16 %v224_v50  ;;  %v230_v2 = vld [vmem:[#allocation5 + $0x568] sm:$0xff] }
 0x1b7   :  { %1291 = vmatpush1.bf16.msra.mxu0 %v565_v61  ;;  %1463 = vmatpush1.bf16.msra.mxu1 %v567_v62  ;;  %v647_v61 = vunpack.c.h.s8.bf16 %v223_v53  ;;  %v654_v62 = vunpack.c.l.s8.bf16 %v230_v2  ;;  %v1563_v53 = vlaneseq }
 0x1b8   :  { %1303 = vmatprep.subr.bf16.mxu0 %v574_v63  ;;  %1475 = vmatprep.subr.bf16.mxu1 %v576_v0  ;;  %v656_v63 = vunpack.c.l.s8.bf16 %v232_v3  ;;  %v229_v0 = vld [vmem:[#allocation5 + $0x560] sm:$0xff] }
 0x1b9   :  { %v653_v5 = vunpack.c.l.s8.bf16 %v229_v0  ;;  %v661_v21 = vunpack.c.h.s8.bf16 %v229_v0  ;;  %v271_v0 = vld [vmem:[#allocation5 + $0x6b0] sm:$0xff] }
 0x1ba   :  { %1293 = vmatmul.mubr.bf16.vlgmr.msra.gmra.mrb[4].mxu0 %v1969_v19  ;;  %1465 = vmatmul.mubr.bf16.vlgmr.msra.gmra.mrb[4].mxu1 %v1969_v19  ;;  %v598_v19 = vunpack.c.h.s8.bf16 %v198_v20  ;;  %v240_v20 = vld [vmem:[#allocation5 + $0x5b8] sm:$0xff] }
 0x1bb   :  { %1304 = vmatpush1.bf16.msra.mxu0 %v573_v6  ;;  %1476 = vmatpush1.bf16.msra.mxu1 %v575_v7  ;;  %v655_v6 = vunpack.c.l.s8.bf16 %v231_v4  ;;  %v662_v7 = vunpack.c.h.s8.bf16 %v230_v2  ;;  %v272_v2 = vld [vmem:[#allocation5 + $0x6b8] sm:$0xff] }
 0x1bc   :  { %1305 = vmatprep.subr.bf16.mxu0 %v582_v8  ;;  %1477 = vmatprep.subr.bf16.mxu1 %v584_v9  ;;  %v664_v8 = vunpack.c.h.s8.bf16 %v232_v3  ;;  %v238_v9 = vld [vmem:[#allocation5 + $0x5a8] sm:$0xff]  ;;  %v2019_v3 = vshrl.u32 %v1563_v53, 7 }
 0x1bd   :  { %1335 = vmatprep.mubr.bf16.mxu0 %v1977_v28  ;;  %1507 = vmatprep.mubr.bf16.mxu1 %v1977_v28  ;;  %v207_v28 = vld [vmem:[#allocation5 + $0x4b0] sm:$0xff] }
 0x1be   :  { %v607_v29 = vunpack.c.l.s8.bf16 %v207_v28  ;;  %v615_v38 = vunpack.c.h.s8.bf16 %v207_v28 }
 0x1bf   :  { %1306 = vmatpush1.bf16.msra.mxu0 %v581_v36  ;;  %1478 = vmatpush1.bf16.msra.mxu1 %v583_v11  ;;  %v663_v36 = vunpack.c.h.s8.bf16 %v231_v4  ;;  %v670_v11 = vunpack.c.l.s8.bf16 %v238_v9  ;;  %v1565_v4 = vsub.s32 0, %v2019_v3 }
 0x1c0   :  { %1307 = vmatprep.subr.bf16.mxu0 %v590_v12  ;;  %1479 = vmatprep.subr.bf16.mxu1 %v592_v13  ;;  %v672_v12 = vunpack.c.l.s8.bf16 %v240_v20  ;;  %v237_v13 = vld [vmem:[#allocation5 + $0x5a0] sm:$0xff] }
 0x1c1   :  { %v669_v15 = vunpack.c.l.s8.bf16 %v237_v13  ;;  %v677_v23 = vunpack.c.h.s8.bf16 %v237_v13 }
 0x1c3   :  { %1308 = vmatpush1.bf16.msra.mxu0 %v589_v16  ;;  %1480 = vmatpush1.bf16.msra.mxu1 %v591_v17  ;;  %v671_v16 = vunpack.c.l.s8.bf16 %v239_v14  ;;  %v678_v17 = vunpack.c.h.s8.bf16 %v238_v9  ;;  %v1569_v9 = vsub.s32 1, %v2019_v3 }
 0x1c4   :  { %1309 = vmatprep.subr.bf16.mxu0 %v598_v19  ;;  %1481 = vmatprep.subr.bf16.mxu1 %v600_v18  ;;  %v680_v19 = vunpack.c.h.s8.bf16 %v240_v20  ;;  %v246_v18 = vld [vmem:[#allocation5 + $0x5e8] sm:$0xff]  ;;  %v1577_v20 = vsub.s32 3, %v2019_v3 }
 0x1c7   :  { %1310 = vmatpush1.bf16.msra.mxu0 %v597_v24  ;;  %1482 = vmatpush1.bf16.msra.mxu1 %v599_v25  ;;  %v679_v24 = vunpack.c.h.s8.bf16 %v239_v14  ;;  %v686_v25 = vunpack.c.l.s8.bf16 %v246_v18 }
 0x1c8   :  { %1311 = vmatprep.subr.bf16.mxu0 %v606_v26  ;;  %1483 = vmatprep.subr.bf16.mxu1 %v608_v27  ;;  %v688_v26 = vunpack.c.l.s8.bf16 %v248_v22  ;;  %v245_v27 = vld [vmem:[#allocation5 + $0x5e0] sm:$0xff] }
 0x1c9   :  { %v685_v28 = vunpack.c.l.s8.bf16 %v245_v27  ;;  %v693_v35 = vunpack.c.h.s8.bf16 %v245_v27 }
 0x1cb   :  { %1312 = vmatpush1.bf16.msra.mxu0 %v605_v46  ;;  %1484 = vmatpush1.bf16.msra.mxu1 %v607_v29  ;;  %v687_v46 = vunpack.c.l.s8.bf16 %v247_v45  ;;  %v694_v29 = vunpack.c.h.s8.bf16 %v246_v18  ;;  %v743_v18 = vunpack.c.h.s8.bf16 %v271_v0 }
 0x1cc   :  { %1313 = vmatprep.subr.bf16.mxu0 %v614_v32  ;;  %1485 = vmatprep.subr.bf16.mxu1 %v616_v33  ;;  %v696_v32 = vunpack.c.h.s8.bf16 %v248_v22  ;;  %v254_v33 = vld [vmem:[#allocation5 + $0x628] sm:$0xff]  ;;  %v277_v22 = vld [vmem:[#allocation5 + $0x6e0] sm:$0xff] }
 0x1cf   :  { %1314 = vmatpush1.bf16.msra.mxu0 %v613_v37  ;;  %1486 = vmatpush1.bf16.msra.mxu1 %v615_v38  ;;  %v695_v37 = vunpack.c.h.s8.bf16 %v247_v45  ;;  %v702_v38 = vunpack.c.l.s8.bf16 %v254_v33 }
 0x1d0   :  { %1315 = vmatprep.subr.bf16.mxu0 %v622_v39  ;;  %1487 = vmatprep.subr.bf16.mxu1 %v624_v40  ;;  %v704_v39 = vunpack.c.l.s8.bf16 %v256_v34  ;;  %v253_v40 = vld [vmem:[#allocation5 + $0x620] sm:$0xff] }
 0x1d1   :  { %v701_v42 = vunpack.c.l.s8.bf16 %v253_v40  ;;  %v709_v50 = vunpack.c.h.s8.bf16 %v253_v40 }
 0x1d3   :  { %1316 = vmatpush1.bf16.msra.mxu0 %v621_v43  ;;  %1488 = vmatpush1.bf16.msra.mxu1 %v623_v47  ;;  %v703_v43 = vunpack.c.l.s8.bf16 %v255_v41  ;;  %v710_v47 = vunpack.c.h.s8.bf16 %v254_v33 }
 0x1d4   :  { %1317 = vmatprep.subr.bf16.mxu0 %v630_v44  ;;  %1489 = vmatprep.subr.bf16.mxu1 %v632_v48  ;;  %v712_v44 = vunpack.c.h.s8.bf16 %v256_v34  ;;  %v262_v48 = vld [vmem:[#allocation5 + $0x668] sm:$0xff] }
 0x1d7   :  { %1318 = vmatpush1.bf16.msra.mxu0 %v629_v51  ;;  %1490 = vmatpush1.bf16.msra.mxu1 %v631_v30  ;;  %v711_v51 = vunpack.c.h.s8.bf16 %v255_v41  ;;  %v718_v30 = vunpack.c.l.s8.bf16 %v262_v48 }
 0x1d8   :  { %1319 = vmatprep.subr.bf16.mxu0 %v638_v31  ;;  %1491 = vmatprep.subr.bf16.mxu1 %v640_v54  ;;  %v720_v31 = vunpack.c.l.s8.bf16 %v264_v49  ;;  %v261_v54 = vld [vmem:[#allocation5 + $0x660] sm:$0xff] }
 0x1db   :  { %1320 = vmatpush1.bf16.msra.mxu0 %v637_v56  ;;  %1492 = vmatpush1.bf16.msra.mxu1 %v639_v57  ;;  %v717_v56 = vunpack.c.l.s8.bf16 %v261_v54  ;;  %v719_v57 = vunpack.c.l.s8.bf16 %v263_v55 }
 0x1dc   :  { %1321 = vmatprep.subr.bf16.mxu0 %v646_v58  ;;  %1493 = vmatprep.subr.bf16.mxu1 %v648_v59  ;;  %v728_v58 = vunpack.c.h.s8.bf16 %v264_v49  ;;  %v270_v59 = vld [vmem:[#allocation5 + $0x6a8] sm:$0xff] }
 0x1df   :  { %1322 = vmatpush1.bf16.msra.mxu0 %v645_v60  ;;  %1494 = vmatpush1.bf16.msra.mxu1 %v647_v61  ;;  %v725_v60 = vunpack.c.h.s8.bf16 %v261_v54  ;;  %v727_v61 = vunpack.c.h.s8.bf16 %v263_v55 }
 0x1e0   :  { %1323 = vmatprep.subr.bf16.mxu0 %v654_v62  ;;  %1495 = vmatprep.subr.bf16.mxu1 %v656_v63  ;;  %v736_v62 = vunpack.c.l.s8.bf16 %v272_v2  ;;  %v269_v63 = vld [vmem:[#allocation5 + $0x6a0] sm:$0xff] }
 0x1e3   :  { %1324 = vmatpush1.bf16.msra.mxu0 %v653_v5  ;;  %1496 = vmatpush1.bf16.msra.mxu1 %v655_v6  ;;  %v1573_v5 = vsub.s32 2, %v2019_v3  ;;  %v733_v6 = vunpack.c.l.s8.bf16 %v269_v63 }
 0x1e4   :  { %1325 = vmatprep.subr.bf16.mxu0 %v662_v7  ;;  %1497 = vmatprep.subr.bf16.mxu1 %v664_v8  ;;  %v735_v7 = vunpack.c.l.s8.bf16 %v271_v0  ;;  %v2023_v8 = vld [vmem:[#allocation7] sm:$0xff]  ;;  %v287_v0 = vld [vmem:[#allocation5 + $0x730] sm:$0xff] }
 0x1e5   :  { %v1566_v13 = vrot.slane %v2023_v8, %v1565_v4  ;;  %v1574_v14 = vrot.slane %v2023_v8, %v1573_v5 }
 0x1e7   :  { %1326 = vmatpush1.bf16.msra.mxu0 %v661_v21  ;;  %1498 = vmatpush1.bf16.msra.mxu1 %v663_v36  ;;  %v742_v21 = vunpack.c.h.s8.bf16 %v270_v59  ;;  %v744_v36 = vunpack.c.h.s8.bf16 %v272_v2 }
 0x1e8   :  { %1327 = vmatprep.subr.bf16.mxu0 %v670_v11  ;;  %1499 = vmatprep.subr.bf16.mxu1 %v672_v12  ;;  %v2030_v11 = vld [vmem:[%s2076_s3] sm:$0xff]  ;;  %v2032_v12 = vld [vmem:[#allocation5 + $0x6e8] sm:$0xff]  ;;  %s1876_s3 = smov [#allocation8]  }
 0x1e9   :  { %s1698_s30 = sshll.u32 %s1876_s3, 4  ;;  %s1699_s30 = int_to_ptr.vmem [resolvable:$true] %s1698_s30 }
 0x1ea   :  { %s1841_s5 = scalar_lea.vmem %s1699_s30, 2048  ;;  %p1846_p11 = scmp.lt.s32.totalorder %s1699_s30, %s1699_s30 }
 0x1eb   :  { %1328 = vmatpush1.bf16.msra.mxu0 %v669_v15  ;;  %1500 = vmatpush1.bf16.msra.mxu1 %v671_v16  ;;  %v280_v15 = vld [vmem:[#allocation5 + $0x6f8] sm:$0xff]  ;;  %v1570_v16 = vrot.slane %v2023_v8, %v1569_v9  ;;  %p1842_p10 = scmp.ne.s32.totalorder %s1699_s30, %s1841_s5  ;;  %p1847_p12 = scmp.lt.s32.totalorder %s1841_s5, %s1841_s5 }
 0x1ec   :  { %1329 = vmatprep.subr.bf16.mxu0 %v678_v17  ;;  %1501 = vmatprep.subr.bf16.mxu1 %v680_v19  ;;  %v1578_v17 = vrot.slane %v2023_v8, %v1577_v20  ;;  %v741_v19 = vunpack.c.h.s8.bf16 %v269_v63  ;;  %v285_v63 = vld [vmem:[#allocation5 + $0x720] sm:$0xff] }
 0x1ed   :  { %p1848_p13 = por %p1847_p12, %p1846_p11 }
 0x1ef   :  { %1330 = vmatpush1.bf16.msra.mxu0 %v677_v23  ;;  %1502 = vmatpush1.bf16.msra.mxu1 %v679_v24  ;;  %v279_v23 = vld [vmem:[#allocation5 + $0x6f0] sm:$0xff]  ;;  %v1624_v24 = vrot.slane %v2030_v11, %v1565_v4  ;;  %v765_v4 = vunpack.c.l.s8.bf16 %v285_v63  ;;  %p1849_p0 = pnand %p1848_p13, %p1842_p10 }
 0x1f0   :  { %1331 = vmatprep.subr.bf16.mxu0 %v686_v25  ;;  %1503 = vmatprep.subr.bf16.mxu1 %v688_v26  ;;  %v1632_v25 = vrot.slane %v2030_v11, %v1573_v5  ;;  %v750_v26 = vunpack.c.l.s8.bf16 %v2032_v12  ;;  %v767_v5 = vunpack.c.l.s8.bf16 %v287_v0 }
 0x1f3   :  { %1332 = vmatpush1.bf16.msra.mxu0 %v685_v28  ;;  %1504 = vmatpush1.bf16.msra.mxu1 %v687_v46  ;;  %v1628_v28 = vrot.slane %v2030_v11, %v1569_v9  ;;  %v1636_v46 = vrot.slane %v2030_v11, %v1577_v20  ;;  %v294_v9 = vld [vmem:[#allocation5 + $0x768] sm:$0xff]  ;;  %v296_v20 = vld [vmem:[#allocation5 + $0x778] sm:$0xff] }
 0x1f4   :  { %1333 = vmatprep.subr.bf16.mxu0 %v694_v29  ;;  %1505 = vmatprep.subr.bf16.mxu1 %v696_v32  ;;  %v752_v29 = vunpack.c.l.s8.bf16 %v280_v15 }
 0x1f7   :  { %1334 = vmatpush1.bf16.msra.mxu0 %v693_v35  ;;  %1506 = vmatpush1.bf16.msra.mxu1 %v695_v37  ;;  %v749_v37 = vunpack.c.l.s8.bf16 %v277_v22 }
 0x1f8   :  { %1346 = vmatprep.subr.bf16.mxu0 %v702_v38  ;;  %1518 = vmatprep.subr.bf16.mxu1 %v704_v39  ;;  %v751_v38 = vunpack.c.l.s8.bf16 %v279_v23 }
 0x1fa   :  { %1336 = vmatmul.mubr.bf16.vlgmr.msra.gmra.mrb[4].mxu0 %v1985_v1  ;;  %1508 = vmatmul.mubr.bf16.vlgmr.msra.gmra.mrb[4].mxu1 %v1985_v1  ;;  %v726_v1 = vunpack.c.h.s8.bf16 %v262_v48 }
 0x1fb   :  { %1347 = vmatpush1.bf16.msra.mxu0 %v701_v42  ;;  %1519 = vmatpush1.bf16.msra.mxu1 %v703_v43  ;;  %v758_v43 = vunpack.c.h.s8.bf16 %v2032_v12  ;;  %v782_v12 = vunpack.c.l.s8.bf16 %v294_v9 }
 0x1fc   :  { %1348 = vmatprep.subr.bf16.mxu0 %v710_v47  ;;  %1520 = vmatprep.subr.bf16.mxu1 %v712_v44  ;;  %v760_v47 = vunpack.c.h.s8.bf16 %v280_v15  ;;  %v295_v15 = vld [vmem:[#allocation5 + $0x770] sm:$0xff] }
 0x1fd   :  { %1378 = vmatprep.mubr.bf16.mxu0 %v1993_v10  ;;  %1550 = vmatprep.mubr.bf16.mxu1 %v1993_v10  ;;  %v734_v10 = vunpack.c.l.s8.bf16 %v270_v59 }
 0x1ff   :  { %1349 = vmatpush1.bf16.msra.mxu0 %v709_v50  ;;  %1521 = vmatpush1.bf16.msra.mxu1 %v711_v51 }
 0x200   :  { %1350 = vmatprep.subr.bf16.mxu0 %v718_v30  ;;  %1522 = vmatprep.subr.bf16.mxu1 %v720_v31 }
 0x203   :  { %1351 = vmatpush1.bf16.msra.mxu0 %v717_v56  ;;  %1523 = vmatpush1.bf16.msra.mxu1 %v719_v57  ;;  %v286_v56 = vld [vmem:[#allocation5 + $0x728] sm:$0xff]  ;;  %v288_v57 = vld [vmem:[#allocation5 + $0x738] sm:$0xff] }
 0x204   :  { %1352 = vmatprep.subr.bf16.mxu0 %v726_v1  ;;  %1524 = vmatprep.subr.bf16.mxu1 %v728_v58 }
 0x207   :  { %1353 = vmatpush1.bf16.msra.mxu0 %v725_v60  ;;  %1525 = vmatpush1.bf16.msra.mxu1 %v727_v61  ;;  %v757_v60 = vunpack.c.h.s8.bf16 %v277_v22  ;;  %v759_v61 = vunpack.c.h.s8.bf16 %v279_v23  ;;  %v302_v22 = vld [vmem:[#allocation5 + $0x7a8] sm:$0xff]  ;;  %v304_v23 = vld [vmem:[#allocation5 + $0x7b8] sm:$0xff] }
 0x208   :  { %1354 = vmatprep.subr.bf16.mxu0 %v734_v10  ;;  %1526 = vmatprep.subr.bf16.mxu1 %v736_v62  ;;  %v766_v10 = vunpack.c.l.s8.bf16 %v286_v56  ;;  %v768_v62 = vunpack.c.l.s8.bf16 %v288_v57 }
 0x20b   :  { %1355 = vmatpush1.bf16.msra.mxu0 %v733_v6  ;;  %1527 = vmatpush1.bf16.msra.mxu1 %v735_v7  ;;  %v774_v6 = vunpack.c.h.s8.bf16 %v286_v56  ;;  %v776_v7 = vunpack.c.h.s8.bf16 %v288_v57 }
 0x20c   :  { %1356 = vmatprep.subr.bf16.mxu0 %v742_v21  ;;  %1528 = vmatprep.subr.bf16.mxu1 %v744_v36  ;;  %v773_v21 = vunpack.c.h.s8.bf16 %v285_v63  ;;  %v775_v36 = vunpack.c.h.s8.bf16 %v287_v0 }
 0x20d   :  { %v1036_v27 = vpop.f32.mrb[0].mxu0  ;;  %v1208_v45 = vpop.f32.mrb[0].mxu1 }
 0x20e   :  { %v1603_v32 = vmul.f32 %v1566_v13, %v1036_v27  ;;  %v1605_v33 = vmul.f32 %v1574_v14, %v1208_v45  ;;  %v1038_v34 = vpop.f32.mrb[1].mxu0  ;;  %v1210_v35 = vpop.f32.mrb[1].mxu1  ;;  %v800_v27 = vunpack.c.l.s8.bf16 %v304_v23  ;;  %v301_v45 = vld [vmem:[#allocation5 + $0x7a0] sm:$0xff] }
 0x20f   :  { %v1604_v39 = vmul.f32 %v1570_v16, %v1038_v34  ;;  %v1606_v40 = vmul.f32 %v1578_v17, %v1210_v35  ;;  %v1040_v41 = vpop.f32.mrb[2].mxu0  ;;  %v1212_v42 = vpop.f32.mrb[2].mxu1  ;;  %1357 = vmatpush1.bf16.msra.mxu0 %v741_v19  ;;  %1529 = vmatpush1.bf16.msra.mxu1 %v743_v18  ;;  %v790_v19 = vunpack.c.h.s8.bf16 %v294_v9  ;;  %v792_v18 = vunpack.c.h.s8.bf16 %v296_v20  ;;  %v310_v34 = vld [vmem:[#allocation5 + $0x7e8] sm:$0xff]  ;;  %v312_v35 = vld [vmem:[#allocation5 + $0x7f8] sm:$0xff] }
 0x210   :  { %v1661_v44 = vadd.f32 %v1624_v24, %v1603_v32  ;;  %v1663_v48 = vadd.f32 %v1632_v25, %v1605_v33  ;;  %v1611_v49 = vmul.f32 %v1566_v13, %v1040_v41  ;;  %v1613_v50 = vmul.f32 %v1574_v14, %v1212_v42  ;;  %v1042_v51 = vpop.f32.mrb[3].mxu0  ;;  %v1214_v30 = vpop.f32.mrb[3].mxu1  ;;  %1358 = vmatprep.subr.bf16.mxu0 %v750_v26  ;;  %v293_v14 = vld [vmem:[#allocation5 + $0x760] sm:$0xff]  ;;  %v311_v42 = vld [vmem:[#allocation5 + $0x7f0] sm:$0xff] }
 0x211   :  { %v1662_v31 = vadd.f32 %v1628_v28, %v1604_v39  ;;  %v1664_v54 = vadd.f32 %v1636_v46, %v1606_v40  ;;  %v1612_v55 = vmul.f32 %v1570_v16, %v1042_v51  ;;  %v1614_v53 = vmul.f32 %v1578_v17, %v1214_v30  ;;  %1530 = vmatprep.subr.bf16.mxu1 %v752_v29  ;;  %v309_v41 = vld [vmem:[#allocation5 + $0x7e0] sm:$0xff] }
 0x212   :  { %1677 = vst [vmem:[#allocation8] sm:$0xff] %v1661_v44  ;;  %1679 = vst [vmem:[#allocation8 + $0x10] sm:$0xff] %v1663_v48  ;;  %v1669_v1 = vadd.f32 %v1624_v24, %v1611_v49  ;;  %v1671_v58 = vadd.f32 %v1632_v25, %v1613_v50  ;;  %v784_v13 = vunpack.c.l.s8.bf16 %v296_v20  ;;  %v781_v16 = vunpack.c.l.s8.bf16 %v293_v14 }
 0x213   :  { %1678 = vst [vmem:[#allocation8 + $0x8] sm:$0xff] %v1662_v31  ;;  %1680 = vst [vmem:[#allocation8 + $0x18] sm:$0xff] %v1664_v54  ;;  %v1670_v59 = vadd.f32 %v1628_v28, %v1612_v55  ;;  %v1672_v2 = vadd.f32 %v1636_v46, %v1614_v53  ;;  %1359 = vmatpush1.bf16.msra.mxu0 %v749_v37  ;;  %1531 = vmatpush1.bf16.msra.mxu1 %v751_v38  ;;  %v783_v17 = vunpack.c.l.s8.bf16 %v295_v15  ;;  %v303_v28 = vld [vmem:[#allocation5 + $0x7b0] sm:$0xff] }
 0x214   :  { %1685 = vst [vmem:[#allocation8 + $0x40] sm:$0xff] %v1669_v1  ;;  %1687 = vst [vmem:[#allocation8 + $0x50] sm:$0xff] %v1671_v58  ;;  %1360 = vmatprep.subr.bf16.mxu0 %v758_v43  ;;  %1532 = vmatprep.subr.bf16.mxu1 %v760_v47  ;;  %v789_v24 = vunpack.c.h.s8.bf16 %v293_v14  ;;  %v791_v25 = vunpack.c.h.s8.bf16 %v295_v15  ;;  %v798_v26 = vunpack.c.l.s8.bf16 %v302_v22  ;;  %v797_v46 = vunpack.c.l.s8.bf16 %v301_v45 }
 0x215   :  { %1686 = vst [vmem:[#allocation8 + $0x48] sm:$0xff] %v1670_v59  ;;  %1688 = vst [vmem:[#allocation8 + $0x58] sm:$0xff] %v1672_v2  ;;  %v799_v29 = vunpack.c.l.s8.bf16 %v303_v28  ;;  %v806_v32 = vunpack.c.h.s8.bf16 %v302_v22  ;;  %v808_v33 = vunpack.c.h.s8.bf16 %v304_v23  ;;  %v805_v37 = vunpack.c.h.s8.bf16 %v301_v45 }
 0x216   :  { %v807_v38 = vunpack.c.h.s8.bf16 %v303_v28  ;;  %v814_v39 = vunpack.c.l.s8.bf16 %v310_v34  ;;  %v816_v40 = vunpack.c.l.s8.bf16 %v312_v35  ;;  %v813_v43 = vunpack.c.l.s8.bf16 %v309_v41 }
 0x217   :  { %1361 = vmatpush1.bf16.msra.mxu0 %v757_v60  ;;  %1533 = vmatpush1.bf16.msra.mxu1 %v759_v61  ;;  %v815_v47 = vunpack.c.l.s8.bf16 %v311_v42  ;;  %v822_v44 = vunpack.c.h.s8.bf16 %v310_v34  ;;  %v824_v48 = vunpack.c.h.s8.bf16 %v312_v35  ;;  %v821_v49 = vunpack.c.h.s8.bf16 %v309_v41 }
 0x218   :  { %1362 = vmatprep.subr.bf16.mxu0 %v766_v10  ;;  %1534 = vmatprep.subr.bf16.mxu1 %v768_v62  ;;  %v823_v50 = vunpack.c.h.s8.bf16 %v311_v42  ;;  %v1581_v51 = vsub.s32 4, %v2019_v3  ;;  %v1589_v30 = vsub.s32 6, %v2019_v3  ;;  %v1585_v31 = vsub.s32 5, %v2019_v3 }
 0x219   :  { %v1593_v54 = vsub.s32 7, %v2019_v3 }
 0x21a   :  { %v1582_v55 = vrot.slane %v2023_v8, %v1581_v51  ;;  %v1590_v53 = vrot.slane %v2023_v8, %v1589_v30  ;;  %v1586_v56 = vrot.slane %v2023_v8, %v1585_v31  ;;  %v1640_v1 = vrot.slane %v2030_v11, %v1581_v51 }
 0x21b   :  { %1363 = vmatpush1.bf16.msra.mxu0 %v765_v4  ;;  %1535 = vmatpush1.bf16.msra.mxu1 %v767_v5  ;;  %v1594_v57 = vrot.slane %v2023_v8, %v1593_v54  ;;  %v1644_v2 = vrot.slane %v2030_v11, %v1585_v31  ;;  %v1652_v60 = vrot.slane %v2030_v11, %v1593_v54 }
 0x21c   :  { %1364 = vmatprep.subr.bf16.mxu0 %v774_v6  ;;  %1536 = vmatprep.subr.bf16.mxu1 %v776_v7 }
 0x21f   :  { %1365 = vmatpush1.bf16.msra.mxu0 %v773_v21  ;;  %1537 = vmatpush1.bf16.msra.mxu1 %v775_v36 }
 0x220   :  { %1366 = vmatprep.subr.bf16.mxu0 %v782_v12  ;;  %1538 = vmatprep.subr.bf16.mxu1 %v784_v13 }
 0x223   :  { %1367 = vmatpush1.bf16.msra.mxu0 %v781_v16  ;;  %1539 = vmatpush1.bf16.msra.mxu1 %v783_v17 }
 0x224   :  { %1368 = vmatprep.subr.bf16.mxu0 %v790_v19  ;;  %1540 = vmatprep.subr.bf16.mxu1 %v792_v18 }
 0x227   :  { %1369 = vmatpush1.bf16.msra.mxu0 %v789_v24  ;;  %1541 = vmatpush1.bf16.msra.mxu1 %v791_v25 }
 0x228   :  { %1370 = vmatprep.subr.bf16.mxu0 %v798_v26  ;;  %1542 = vmatprep.subr.bf16.mxu1 %v800_v27 }
 0x22b   :  { %1371 = vmatpush1.bf16.msra.mxu0 %v797_v46  ;;  %1543 = vmatpush1.bf16.msra.mxu1 %v799_v29 }
 0x22c   :  { %1372 = vmatprep.subr.bf16.mxu0 %v806_v32  ;;  %1544 = vmatprep.subr.bf16.mxu1 %v808_v33 }
 0x22f   :  { %1373 = vmatpush1.bf16.msra.mxu0 %v805_v37  ;;  %1545 = vmatpush1.bf16.msra.mxu1 %v807_v38 }
 0x230   :  { %1374 = vmatprep.subr.bf16.mxu0 %v814_v39  ;;  %1546 = vmatprep.subr.bf16.mxu1 %v816_v40 }
 0x233   :  { %1375 = vmatpush1.bf16.msra.mxu0 %v813_v43  ;;  %1547 = vmatpush1.bf16.msra.mxu1 %v815_v47 }
 0x234   :  { %1376 = vmatprep.subr.bf16.mxu0 %v822_v44  ;;  %1548 = vmatprep.subr.bf16.mxu1 %v824_v48 }
 0x237   :  { %1377 = vmatpush1.bf16.msra.mxu0 %v821_v49  ;;  %1549 = vmatpush1.bf16.msra.mxu1 %v823_v50 }
 0x23a   :  { %1379 = vmatmul.mubr.bf16.vlgmr.msra.gmra.mrb[4].mxu0 %v2001_v52  ;;  %1551 = vmatmul.mubr.bf16.vlgmr.msra.gmra.mrb[4].mxu1 %v2001_v52  ;;  %v1648_v52 = vrot.slane %v2030_v11, %v1589_v30 }
 0x30d   :  { %v1380_v58 = vpop.f32.mrb[4].mxu0  ;;  %v1552_v59 = vpop.f32.mrb[4].mxu1 }
 0x30e   :  { %v1607_v61 = vmul.f32 %v1582_v55, %v1380_v58  ;;  %v1609_v3 = vmul.f32 %v1590_v53, %v1552_v59  ;;  %v1382_v10 = vpop.f32.mrb[5].mxu0  ;;  %v1554_v62 = vpop.f32.mrb[5].mxu1 }
 0x30f   :  { %v1608_v63 = vmul.f32 %v1586_v56, %v1382_v10  ;;  %v1610_v0 = vmul.f32 %v1594_v57, %v1554_v62  ;;  %v1384_v4 = vpop.f32.mrb[6].mxu0  ;;  %v1556_v5 = vpop.f32.mrb[6].mxu1 }
 0x310   :  { %v1665_v6 = vadd.f32 %v1640_v1, %v1607_v61  ;;  %v1667_v8 = vadd.f32 %v1648_v52, %v1609_v3  ;;  %v1615_v7 = vmul.f32 %v1582_v55, %v1384_v4  ;;  %v1617_v9 = vmul.f32 %v1590_v53, %v1556_v5  ;;  %v1386_v20 = vpop.f32.mrb[7].mxu0  ;;  %v1558_v21 = vpop.f32.mrb[7].mxu1 }
 0x311   :  { %v1666_v36 = vadd.f32 %v1644_v2, %v1608_v63  ;;  %v1668_v12 = vadd.f32 %v1652_v60, %v1610_v0  ;;  %v1616_v13 = vmul.f32 %v1586_v56, %v1386_v20  ;;  %v1618_v11 = vmul.f32 %v1594_v57, %v1558_v21 }
 0x312   :  { %1681 = vst [vmem:[#allocation8 + $0x20] sm:$0xff] %v1665_v6  ;;  %1683 = vst [vmem:[#allocation8 + $0x30] sm:$0xff] %v1667_v8  ;;  %v1673_v14 = vadd.f32 %v1640_v1, %v1615_v7  ;;  %v1675_v15 = vadd.f32 %v1648_v52, %v1617_v9 }
 0x313   :  { %1682 = vst [vmem:[#allocation8 + $0x28] sm:$0xff] %v1666_v36  ;;  %1684 = vst [vmem:[#allocation8 + $0x38] sm:$0xff] %v1668_v12  ;;  %v1674_v16 = vadd.f32 %v1644_v2, %v1616_v13  ;;  %v1676_v17 = vadd.f32 %v1652_v60, %v1618_v11 }
 0x314   :  { %1689 = vst [vmem:[#allocation8 + $0x60] sm:$0xff] %v1673_v14  ;;  %1691 = vst [vmem:[#allocation8 + $0x70] sm:$0xff] %v1675_v15 }
 0x315   :  { %1690 = vst [vmem:[#allocation8 + $0x68] sm:$0xff] %v1674_v16  ;;  %1692 = vst [vmem:[#allocation8 + $0x78] sm:$0xff] %v1676_v17 }
 0x316   :  { %1852 = shalt.err (!%p1849_p0)
}
 0x317   :  { %s1853_s8 = scalar_lea.hbm %s2077_s4, 2048 }
 0x318   :  { %p1854_p1 = scmp.ne.s32.totalorder %s2077_s4, %s1853_s8  ;;  %p1857_p2 = scmp.lt.u32.totalorder %s1853_s8, %s2077_s4 }
 0x31a   :  { %p1859_p3 = pnand %p1857_p2, %p1854_p1 }
 0x31c   :  { %1862 = shalt.err (!%p1859_p3)
}
 0x31d   :  { %1704 = dma.vmem_to_hbm [thread:$0]  %s1699_s30, 2048, %s2077_s4, [#allocation4], %s1870_s25, %s1870_s25, %s1871_s26  }
 0x31e   :  { %1867 = dma.done.wait [#allocation4], 2048  }
 0x31f   :  { %1868 = vsyncadd [#allocation4], 4294965248 }
 0x320   :  { %1708 = vsyncpa [#allocation3], 1 }
 0x321   :  { %1709 = vsyncpa [#allocation6], 1 }
 0x322   :  { %1710 = vsyncpa [#allocation4], 1 }

</bundles_post_ra>
